<compile_context>
chip_gen: v7x
topology: tpu7x:2x2x1
jax: 0.10.0
libtpu: 0.0.40
codegen_flags: <defaults>
</compile_context>

<pallas_src>
import jax
import jax.numpy as jnp
from jax.experimental import pallas as pl
from jax.experimental.pallas import tpu as pltpu


def _round_up(a, b):
    return ((a + b - 1) // b) * b


def _choose_batch_tile(N):
    """Batch tile: fill the 256-wide MXU when possible, but keep >=2 grid steps for
    moderate batches so both v7x TensorCores get work."""
    target = 256
    if N >= 2 * target:
        return target
    half = -(-N // 2)                      # ceil(N / 2)
    return max(8, min(target, _round_up(half, 8)))


# ---------------------------------------------------------------------------
# Fused AuxiliaryHead kernel: three back-to-back GEMMs on a flat bf16 input tile
# ---------------------------------------------------------------------------
def _aux_head_kernel(x_ref, wp1_ref, b1_ref, w2_ref, b2_ref, wl_ref, bl_ref, o_ref):
    # x_ref  : (BT, C*H*W)   bf16  flattened NCHW input tile
    # wp1_ref: (C*H*W, 512)  bf16  fused ReLU->AvgPool->1x1conv(+BN1) weight
    # b1_ref : (1, 512)      f32   BN1 bias tiled over the 4 pooled positions
    # w2_ref : (512, 768)    bf16  2x2 conv weight flattened (kh,kw,ic), BN2 folded
    # b2_ref : (1, 768)      f32
    # wl_ref : (768, NC_pad) bf16  classifier weight, classes zero-padded to 128 lanes
    # bl_ref : (1, NC_pad)   f32
    # o_ref  : (BT, NC_pad)  f32
    x = jnp.maximum(x_ref[...], 0)                                  # ReLU (bf16)

    # ReLU -> AvgPool(5) -> Conv1x1 (+BN1) as one lane-dense GEMM, then ReLU.
    y1 = jnp.dot(x, wp1_ref[...],
                 preferred_element_type=jnp.float32) + b1_ref[...]  # (BT, 512)
    y1 = jnp.maximum(y1, 0.0)                                       # (kh,kw,ic) order

    # 2x2 conv on the 2x2 pooled map (spatial output 1x1) == one GEMM (+BN2) + ReLU.
    y2 = jnp.dot(y1.astype(jnp.bfloat16), w2_ref[...],
                 preferred_element_type=jnp.float32) + b2_ref[...]  # (BT, 768)
    y2 = jnp.maximum(y2, 0.0)

    # Linear(768, n_classes), lane-dense padded output.
    logits = jnp.dot(y2.astype(jnp.bfloat16), wl_ref[...],
                     preferred_element_type=jnp.float32) + bl_ref[...]
    o_ref[...] = logits.astype(o_ref.dtype)


def aux_head_pallas(x_flat, wp1, b1, w2, b2, wl, bl, *, batch_tile):
    N, K = x_flat.shape
    nc_pad = wl.shape[1]
    bt = batch_tile
    assert N % bt == 0, "wrapper pads the batch to a multiple of the batch tile"
    return pl.pallas_call(
        _aux_head_kernel,
        out_shape=jax.ShapeDtypeStruct((N, nc_pad), jnp.float32),
        grid_spec=pltpu.PrefetchScalarGridSpec(
            num_scalar_prefetch=0,
            grid=(N // bt,),
            in_specs=[
                pl.BlockSpec((bt, K), lambda i: (i, 0)),
                pl.BlockSpec(wp1.shape, lambda i: (0, 0)),
                pl.BlockSpec(b1.shape, lambda i: (0, 0)),
                pl.BlockSpec(w2.shape, lambda i: (0, 0)),
                pl.BlockSpec(b2.shape, lambda i: (0, 0)),
                pl.BlockSpec(wl.shape, lambda i: (0, 0)),
                pl.BlockSpec(bl.shape, lambda i: (0, 0)),
            ],
            out_specs=pl.BlockSpec((bt, nc_pad), lambda i: (i, 0)),
        ),
        compiler_params=pltpu.CompilerParams(
            dimension_semantics=("parallel",)),
    )(x_flat, wp1, b1, w2, b2, wl, bl)


# ---------------------------------------------------------------------------
# Module wrapper (matches the PyTorch AuxiliaryHead interface / semantics)
# ---------------------------------------------------------------------------
class AuxiliaryHeadPallas:
    """Pallas version of AuxiliaryHead (eval-mode BatchNorm folded into weights)."""

    def __init__(self, input_size, C, n_classes, key=None, eps=1e-5):
        assert input_size in (7, 8)
        if key is None:
            key = jax.random.PRNGKey(0)
        self.input_size = input_size
        self.C = C
        self.n_classes = n_classes
        self.stride = input_size - 5
        self.eps = eps

        ks = jax.random.split(key, 12)
        n = jax.random.normal
        self.params = {
            # Conv2d(C, 128, 1, bias=False) weight, HWIO
            "w1": 0.1 * n(ks[0], (1, 1, C, 128), jnp.float32),
            "gamma1": 1.0 + 0.1 * n(ks[1], (128,), jnp.float32),
            "beta1": 0.1 * n(ks[2], (128,), jnp.float32),
            "mean1": 0.1 * n(ks[3], (128,), jnp.float32),
            "var1": 1.0 + 0.1 * jnp.abs(n(ks[4], (128,), jnp.float32)),
            # Conv2d(128, 768, 2, bias=False) weight, HWIO
            "w2": 0.1 * n(ks[5], (2, 2, 128, 768), jnp.float32),
            "gamma2": 1.0 + 0.1 * n(ks[6], (768,), jnp.float32),
            "beta2": 0.1 * n(ks[7], (768,), jnp.float32),
            "mean2": 0.1 * n(ks[8], (768,), jnp.float32),
            "var2": 1.0 + 0.1 * jnp.abs(n(ks[9], (768,), jnp.float32)),
            # Linear(768, n_classes)
            "wl": 0.1 * n(ks[10], (768, n_classes), jnp.float32),
            "bl": jnp.linspace(-0.1, 0.1, n_classes, dtype=jnp.float32),
        }
        self._fold_weights()

    def _fold_weights(self):
        """One-time fold: BN1 + AvgPool + 1x1 conv -> one GEMM weight; BN2 -> conv2;
        classifier lane-padded to a multiple of 128."""
        p, eps = self.params, self.eps
        H = W = self.input_size
        s = self.stride
        C = self.C

        sc1 = p["gamma1"] / jnp.sqrt(p["var1"] + eps)
        sc2 = p["gamma2"] / jnp.sqrt(p["var2"] + eps)
        w1f = p["w1"].reshape(C, 128) * sc1[None, :]           # BN1 folded, (C,128)

        # AvgPool2d(5, stride, pad=0) as a linear map: mask[h,w,kh,kw] = 1/25 inside the
        # (kh,kw) pooling window (count_include_pad is irrelevant: no padding).
        mask = jnp.zeros((H, W, 2, 2), jnp.float32)
        for a in range(2):
            for b in range(2):
                mask = mask.at[a * s:a * s + 5, b * s:b * s + 5, a, b].set(1.0 / 25.0)

        # Fused ReLU->AvgPool->1x1conv(+BN1) weight.  Rows ordered (c,h,w) so a plain
        # reshape of the NCHW input works (no transpose); cols ordered (kh,kw,oc) so the
        # result feeds the 2x2-conv GEMM directly.
        wp1 = jnp.einsum("hwab,co->chwabo", mask, w1f).reshape(C * H * W, 4 * 128)
        self.wp1_k = wp1.astype(jnp.bfloat16)
        b1 = (p["beta1"] - p["mean1"] * sc1).astype(jnp.float32)
        self.b1_k = jnp.tile(b1.reshape(1, 128), (1, 4))        # (1, 512)

        # HWIO (2,2,128,768) -> rows ordered (kh,kw,ic); BN2 scale folded.
        self.w2_k = (p["w2"].reshape(4 * 128, 768) * sc2[None, :]).astype(jnp.bfloat16)
        self.b2_k = (p["beta2"] - p["mean2"] * sc2).reshape(1, 768).astype(jnp.float32)

        self.nc_pad = _round_up(self.n_classes, 128)
        wl_pad = jnp.zeros((768, self.nc_pad), jnp.float32)
        wl_pad = wl_pad.at[:, :self.n_classes].set(p["wl"])
        bl_pad = jnp.zeros((1, self.nc_pad), jnp.float32)
        bl_pad = bl_pad.at[0, :self.n_classes].set(p["bl"])
        self.wl_k = wl_pad.astype(jnp.bfloat16)
        self.bl_k = bl_pad

    def forward(self, x_nchw):
        # TODO(synk): debug print() calls of the original forward are omitted.
        N = x_nchw.shape[0]
        # Flatten NCHW directly (fused-weight rows are in (c,h,w) order) and stream bf16
        # so the only large HBM->VMEM DMA is contiguous and half-size.
        x_flat = x_nchw.reshape(N, -1).astype(jnp.bfloat16)
        bt = _choose_batch_tile(N)
        n_pad = _round_up(N, bt)
        if n_pad != N:
            x_flat = jnp.pad(x_flat, ((0, n_pad - N), (0, 0)))
        out = aux_head_pallas(x_flat, self.wp1_k, self.b1_k, self.w2_k, self.b2_k,
                              self.wl_k, self.bl_k, batch_tile=bt)
        # Padded rows / padded class lanes are sliced off here.
        return out[:N, :self.n_classes]


# ---------------------------------------------------------------------------
# Pure-JAX reference (f32, unfolded) for correctness check
# ---------------------------------------------------------------------------
def reference_forward(x_nchw, params, *, input_size, eps=1e-5):
    x = jnp.transpose(x_nchw, (0, 2, 3, 1)).astype(jnp.float32)
    x = jnp.maximum(x, 0.0)
    s = input_size - 5
    pooled = jax.lax.reduce_window(x, 0.0, jax.lax.add,
                                   (1, 5, 5, 1), (1, s, s, 1), "VALID") / 25.0
    y = jax.lax.conv_general_dilated(pooled, params["w1"], (1, 1), "VALID",
                                     dimension_numbers=("NHWC", "HWIO", "NHWC"))
    sc1 = params["gamma1"] / jnp.sqrt(params["var1"] + eps)
    y = jnp.maximum(y * sc1 + (params["beta1"] - params["mean1"] * sc1), 0.0)
    y = jax.lax.conv_general_dilated(y, params["w2"], (1, 1), "VALID",
                                     dimension_numbers=("NHWC", "HWIO", "NHWC"))
    sc2 = params["gamma2"] / jnp.sqrt(params["var2"] + eps)
    y = jnp.maximum(y * sc2 + (params["beta2"] - params["mean2"] * sc2), 0.0)
    y = y.reshape(y.shape[0], -1)                          # (N, 768)
    return y @ params["wl"] + params["bl"]


if __name__ == "__main__":
    n_classes, batch = 10, 2
    for input_size, C in ((8, 4), (7, 4)):
        model = AuxiliaryHeadPallas(input_size, C, n_classes,
                                    key=jax.random.PRNGKey(0))
        x = jax.random.normal(jax.random.PRNGKey(0),
                              (batch, C, input_size, input_size), jnp.float32)

        logits = jax.block_until_ready(model.forward(x))
        assert logits.shape == (batch, n_classes)

        ref = jax.block_until_ready(
            reference_forward(x, model.params, input_size=input_size))
        err = float(jnp.max(jnp.abs(logits - ref)))
        assert jnp.allclose(logits, ref, atol=5e-2, rtol=5e-2), (
            f"input_size={input_size}: max abs err {err}")

    print("KERNEL_OK")
</pallas_src>

<mosaic_0001>
module attributes {stable_mosaic.version = 11 : i64} {
  func.func @_aux_head_kernel(%arg0: i32, %arg1: memref<8x256xbf16, #tpu.memory_space<vmem>>, %arg2: memref<256x512xbf16, #tpu.memory_space<vmem>>, %arg3: memref<1x512xf32, #tpu.memory_space<vmem>>, %arg4: memref<512x768xbf16, #tpu.memory_space<vmem>>, %arg5: memref<1x768xf32, #tpu.memory_space<vmem>>, %arg6: memref<768x128xbf16, #tpu.memory_space<vmem>>, %arg7: memref<1x128xf32, #tpu.memory_space<vmem>>, %arg8: memref<8x128xf32, #tpu.memory_space<vmem>>) attributes {dimension_semantics = [#tpu.dimension_semantics<parallel>], iteration_bounds = array<i64: 1>, scalar_prefetch = 0 : i64, scratch_operands = 0 : i64, tpu.core_type = #tpu.core_type<tc>, window_params = [{transform_indices = @transform_0, window_bounds = array<i64: 8, 256>}, {pipeline_mode = #tpu.pipeline_mode<synchronous>, transform_indices = @transform_1, window_bounds = array<i64: 256, 512>}, {pipeline_mode = #tpu.pipeline_mode<synchronous>, transform_indices = @transform_2, window_bounds = array<i64: 1, 512>}, {pipeline_mode = #tpu.pipeline_mode<synchronous>, transform_indices = @transform_3, window_bounds = array<i64: 512, 768>}, {pipeline_mode = #tpu.pipeline_mode<synchronous>, transform_indices = @transform_4, window_bounds = array<i64: 1, 768>}, {pipeline_mode = #tpu.pipeline_mode<synchronous>, transform_indices = @transform_5, window_bounds = array<i64: 768, 128>}, {pipeline_mode = #tpu.pipeline_mode<synchronous>, transform_indices = @transform_6, window_bounds = array<i64: 1, 128>}, {transform_indices = @transform_7, window_bounds = array<i64: 8, 128>}]} {
    %c0 = arith.constant 0 : index
    %c0_0 = arith.constant 0 : index
    %0 = vector.load %arg1[%c0, %c0_0] : memref<8x256xbf16, #tpu.memory_space<vmem>>, vector<8x256xbf16>
    %cst = arith.constant 0.000000e+00 : bf16
    %1 = vector.broadcast %cst : bf16 to vector<8x256xbf16>
    %2 = arith.maximumf %0, %1 : vector<8x256xbf16>
    %c0_1 = arith.constant 0 : index
    %c0_2 = arith.constant 0 : index
    %3 = vector.load %arg2[%c0_1, %c0_2] : memref<256x512xbf16, #tpu.memory_space<vmem>>, vector<256x512xbf16>
    %cst_3 = arith.constant dense<0.000000e+00> : vector<8x512xf32>
    %4 = tpu.matmul %2, %3, %cst_3 {dimension_numbers = #tpu.dot_dimension_numbers<[1], [0], [0], [1], [0, 0, 1, 1], [], []>} : vector<8x256xbf16>, vector<256x512xbf16>, vector<8x512xf32> -> vector<8x512xf32>
    %c0_4 = arith.constant 0 : index
    %c0_5 = arith.constant 0 : index
    %5 = vector.load %arg3[%c0_4, %c0_5] : memref<1x512xf32, #tpu.memory_space<vmem>>, vector<1x512xf32>
    %6 = vector.broadcast %5 : vector<1x512xf32> to vector<8x512xf32>
    %7 = arith.addf %4, %6 : vector<8x512xf32>
    %cst_6 = arith.constant 0.000000e+00 : f32
    %8 = vector.broadcast %cst_6 : f32 to vector<8x512xf32>
    %9 = arith.maximumf %7, %8 : vector<8x512xf32>
    %10 = arith.truncf %9 : vector<8x512xf32> to vector<8x512xbf16>
    %c0_7 = arith.constant 0 : index
    %c0_8 = arith.constant 0 : index
    %11 = vector.load %arg4[%c0_7, %c0_8] : memref<512x768xbf16, #tpu.memory_space<vmem>>, vector<512x768xbf16>
    %cst_9 = arith.constant dense<0.000000e+00> : vector<8x768xf32>
    %12 = tpu.matmul %10, %11, %cst_9 {dimension_numbers = #tpu.dot_dimension_numbers<[1], [0], [0], [1], [0, 0, 1, 1], [], []>} : vector<8x512xbf16>, vector<512x768xbf16>, vector<8x768xf32> -> vector<8x768xf32>
    %c0_10 = arith.constant 0 : index
    %c0_11 = arith.constant 0 : index
    %13 = vector.load %arg5[%c0_10, %c0_11] : memref<1x768xf32, #tpu.memory_space<vmem>>, vector<1x768xf32>
    %14 = vector.broadcast %13 : vector<1x768xf32> to vector<8x768xf32>
    %15 = arith.addf %12, %14 : vector<8x768xf32>
    %cst_12 = arith.constant 0.000000e+00 : f32
    %16 = vector.broadcast %cst_12 : f32 to vector<8x768xf32>
    %17 = arith.maximumf %15, %16 : vector<8x768xf32>
    %18 = arith.truncf %17 : vector<8x768xf32> to vector<8x768xbf16>
    %c0_13 = arith.constant 0 : index
    %c0_14 = arith.constant 0 : index
    %19 = vector.load %arg6[%c0_13, %c0_14] : memref<768x128xbf16, #tpu.memory_space<vmem>>, vector<768x128xbf16>
    %cst_15 = arith.constant dense<0.000000e+00> : vector<8x128xf32>
    %20 = tpu.matmul %18, %19, %cst_15 {dimension_numbers = #tpu.dot_dimension_numbers<[1], [0], [0], [1], [0, 0, 1, 1], [], []>} : vector<8x768xbf16>, vector<768x128xbf16>, vector<8x128xf32> -> vector<8x128xf32>
    %c0_16 = arith.constant 0 : index
    %c0_17 = arith.constant 0 : index
    %21 = vector.load %arg7[%c0_16, %c0_17] : memref<1x128xf32, #tpu.memory_space<vmem>>, vector<1x128xf32>
    %22 = vector.broadcast %21 : vector<1x128xf32> to vector<8x128xf32>
    %23 = arith.addf %20, %22 : vector<8x128xf32>
    %c0_18 = arith.constant 0 : index
    %c0_19 = arith.constant 0 : index
    %24 = vector.load %arg8[%c0_18, %c0_19] : memref<8x128xf32, #tpu.memory_space<vmem>>, vector<8x128xf32>
    tpu.vector_store %arg8[%c0_18, %c0_19], %23 {strides = array<i32>} : memref<8x128xf32, #tpu.memory_space<vmem>>, vector<8x128xf32>,
    return
  }
  func.func @transform_0(%arg0: i32) -> (i32, i32) {
    %c0_i32 = arith.constant 0 : i32
    %c0_i32_0 = arith.constant 0 : i32
    return %arg0, %c0_i32 : i32, i32
  }
  func.func @transform_1(%arg0: i32) -> (i32, i32) {
    %c0_i32 = arith.constant 0 : i32
    %c0_i32_0 = arith.constant 0 : i32
    %c0_i32_1 = arith.constant 0 : i32
    return %c0_i32, %c0_i32_0 : i32, i32
  }
  func.func @transform_2(%arg0: i32) -> (i32, i32) {
    %c0_i32 = arith.constant 0 : i32
    %c0_i32_0 = arith.constant 0 : i32
    %c0_i32_1 = arith.constant 0 : i32
    return %c0_i32, %c0_i32_0 : i32, i32
  }
  func.func @transform_3(%arg0: i32) -> (i32, i32) {
    %c0_i32 = arith.constant 0 : i32
    %c0_i32_0 = arith.constant 0 : i32
    %c0_i32_1 = arith.constant 0 : i32
    return %c0_i32, %c0_i32_0 : i32, i32
  }
  func.func @transform_4(%arg0: i32) -> (i32, i32) {
    %c0_i32 = arith.constant 0 : i32
    %c0_i32_0 = arith.constant 0 : i32
    %c0_i32_1 = arith.constant 0 : i32
    return %c0_i32, %c0_i32_0 : i32, i32
  }
  func.func @transform_5(%arg0: i32) -> (i32, i32) {
    %c0_i32 = arith.constant 0 : i32
    %c0_i32_0 = arith.constant 0 : i32
    %c0_i32_1 = arith.constant 0 : i32
    return %c0_i32, %c0_i32_0 : i32, i32
  }
  func.func @transform_6(%arg0: i32) -> (i32, i32) {
    %c0_i32 = arith.constant 0 : i32
    %c0_i32_0 = arith.constant 0 : i32
    %c0_i32_1 = arith.constant 0 : i32
    return %c0_i32, %c0_i32_0 : i32, i32
  }
  func.func @transform_7(%arg0: i32) -> (i32, i32) {
    %c0_i32 = arith.constant 0 : i32
    %c0_i32_0 = arith.constant 0 : i32
    return %arg0, %c0_i32 : i32, i32
  }
}

</mosaic_0001>

<bundles_post_ra>
// kernel: tpu_custom_call.1
= control target key start
LH: loop header
LB: loop body
LE: loop exit
PB: predicated region body
PF: predicated region fallthrough
CT: control target
= control target key end

     0   :  { %12 = vsyncpa [#allocation3], 0  ;;  %s3698_s0 = inlined_call_operand.hbm [shape: bf16[8,256], index: 0, kind: input, shape index: {}]   ;;  %s3699_s1 = inlined_call_operand.hbm [shape: bf16[256,512], index: 1, kind: input, shape index: {}]   ;;  %s3700_s2 = inlined_call_operand.vmem [shape: f32[1,512], index: 2, kind: input, shape index: {}]   ;;  %s3701_s3 = inlined_call_operand.hbm [shape: bf16[512,768], index: 3, kind: input, shape index: {}]   ;;  %s3702_s4 = inlined_call_operand.vmem [shape: f32[1,768], index: 4, kind: input, shape index: {}]   ;;  %s3703_s5 = inlined_call_operand.hbm [shape: bf16[768,128], index: 5, kind: input, shape index: {}]   ;;  %s3704_s6 = inlined_call_operand.vmem [shape: f32[1,128], index: 6, kind: input, shape index: {}]   ;;  %s3705_s7 = inlined_call_operand.hbm [shape: f32[8,128], index: 7, kind: output, shape index: {}]  }
   0x1   :  { %13 = vsyncpa [#allocation6], 0 }
   0x2   :  { %14 = vsyncpa [#allocation9], 0 }
   0x3   :  { %15 = vsyncpa [#allocation4], 0  ;;  %s3510_s24 = smov [#allocation5]   ;;  %s3392_s28 = scalar_lea.hbm %s3699_s1, 8192 }
   0x4   :  { %s31_s25 = sshll.u32 %s3510_s24, 4  ;;  %p3393_p0 = scmp.ne.s32.totalorder %s3699_s1, %s3392_s28  ;;  %s32_s25 = int_to_ptr.vmem [resolvable:$true] %s31_s25 }
   0x5   :  { %p3396_p1 = scmp.lt.u32.totalorder %s3392_s28, %s3699_s1 }
   0x7   :  { %p3398_p2 = pnand %p3396_p1, %p3393_p0 }
   0x9   :  { %3401 = shalt.err (!%p3398_p2)
}
   0xa   :  { %s3402_s10 = scalar_lea.vmem %s32_s25, 8192  ;;  %p3407_p4 = scmp.lt.s32.totalorder %s32_s25, %s32_s25 }
   0xb   :  { %p3403_p3 = scmp.ne.s32.totalorder %s32_s25, %s3402_s10  ;;  %p3408_p5 = scmp.lt.s32.totalorder %s3402_s10, %s3402_s10 }
   0xd   :  { %p3409_p6 = por %p3408_p5, %p3407_p4 }
   0xf   :  { %p3410_p7 = pnand %p3409_p6, %p3403_p3 }
  0x11   :  { %3413 = shalt.err (!%p3410_p7)
}
  0x12   :  { %s3511_s11 = smov 256   ;;  %s3512_s12 = smov 16  }
  0x13   :  { %37 = dma.hbm_to_vmem [thread:$0]  %s3699_s1, 8192, %s32_s25, [#allocation6], %s3511_s11, %s3511_s11, %s3512_s12  }
  0x14   :  { %s3513_s15 = smov [#allocation2]   ;;  %s3514_s17 = smov [#allocation7]  }
  0x15   :  { %s22_s16 = sshll.u32 %s3513_s15, 4  ;;  %s45_s18 = sshll.u32 %s3514_s17, 4  ;;  %s23_s16 = int_to_ptr.vmem [resolvable:$true] %s22_s16  ;;  %s46_s18 = int_to_ptr.vmem [resolvable:$true] %s45_s18 }
  0x16   :  { %s3414_s21 = scalar_lea.hbm %s3698_s0, 128 }
  0x17   :  { %p3415_p8 = scmp.ne.s32.totalorder %s3698_s0, %s3414_s21  ;;  %p3418_p9 = scmp.lt.u32.totalorder %s3414_s21, %s3698_s0 }
  0x19   :  { %p3420_p10 = pnand %p3418_p9, %p3415_p8 }
  0x1b   :  { %3423 = shalt.err (!%p3420_p10)
}
  0x1c   :  { %s3424_s1 = scalar_lea.vmem %s23_s16, 128  ;;  %p3429_p12 = scmp.lt.s32.totalorder %s23_s16, %s23_s16 }
  0x1d   :  { %p3425_p11 = scmp.ne.s32.totalorder %s23_s16, %s3424_s1  ;;  %p3430_p13 = scmp.lt.s32.totalorder %s3424_s1, %s3424_s1 }
  0x1f   :  { %p3431_p0 = por %p3430_p13, %p3429_p12 }
  0x21   :  { %p3432_p1 = pnand %p3431_p0, %p3425_p11 }
  0x23   :  { %3435 = shalt.err (!%p3432_p1)
}
  0x24   :  { %25 = dma.hbm_to_vmem [thread:$0]  %s3698_s0, 128, %s23_s16, [#allocation3]  }
  0x25   :  { %s3436_s30 = scalar_lea.hbm %s3701_s3, 24576 }
  0x26   :  { %p3437_p2 = scmp.ne.s32.totalorder %s3701_s3, %s3436_s30  ;;  %p3440_p3 = scmp.lt.u32.totalorder %s3436_s30, %s3701_s3 }
  0x28   :  { %p3442_p4 = pnand %p3440_p3, %p3437_p2 }
  0x2a   :  { %3445 = shalt.err (!%p3442_p4)
}
  0x2b   :  { %s3446_s12 = scalar_lea.vmem %s46_s18, 24576  ;;  %p3451_p6 = scmp.lt.s32.totalorder %s46_s18, %s46_s18 }
  0x2c   :  { %p3447_p5 = scmp.ne.s32.totalorder %s46_s18, %s3446_s12  ;;  %p3452_p7 = scmp.lt.s32.totalorder %s3446_s12, %s3446_s12 }
  0x2e   :  { %p3453_p8 = por %p3452_p7, %p3451_p6 }
  0x30   :  { %p3454_p9 = pnand %p3453_p8, %p3447_p5 }
  0x32   :  { %3457 = shalt.err (!%p3454_p9)
}
  0x33   :  { %s3515_s0 = smov 384   ;;  %s3516_s13 = smov 24  }
  0x34   :  { %51 = dma.hbm_to_vmem [thread:$0]  %s3701_s3, 24576, %s46_s18, [#allocation6], %s3515_s0, %s3515_s0, %s3516_s13  }
  0x35   :  { %s3517_s16 = smov [#allocation8]   ;;  %s3458_s21 = scalar_lea.hbm %s3703_s5, 6144 }
  0x36   :  { %s59_s17 = sshll.u32 %s3517_s16, 4  ;;  %p3459_p10 = scmp.ne.s32.totalorder %s3703_s5, %s3458_s21  ;;  %s60_s17 = int_to_ptr.vmem [resolvable:$true] %s59_s17 }
  0x37   :  { %p3462_p11 = scmp.lt.u32.totalorder %s3458_s21, %s3703_s5 }
  0x39   :  { %p3464_p12 = pnand %p3462_p11, %p3459_p10 }
  0x3b   :  { %3467 = shalt.err (!%p3464_p12)
}
  0x3c   :  { %s3468_s1 = scalar_lea.vmem %s60_s17, 6144  ;;  %p3473_p0 = scmp.lt.s32.totalorder %s60_s17, %s60_s17 }
  0x3d   :  { %p3469_p13 = scmp.ne.s32.totalorder %s60_s17, %s3468_s1  ;;  %p3474_p1 = scmp.lt.s32.totalorder %s3468_s1, %s3468_s1 }
  0x3f   :  { %p3475_p2 = por %p3474_p1, %p3473_p0 }
  0x41   :  { %p3476_p3 = pnand %p3475_p2, %p3469_p13 }
  0x43   :  { %3479 = shalt.err (!%p3476_p3)
}
  0x44   :  { %s3518_s3 = smov 64   ;;  %s3519_s18 = smov 4  }
  0x45   :  { %65 = dma.hbm_to_vmem [thread:$0]  %s3703_s5, 6144, %s60_s17, [#allocation9], %s3518_s3, %s3518_s3, %s3519_s18  }
  0x46   :  { %3502 = dma.done.wait [#allocation3], 128  }
  0x47   :  { %3503 = vsyncadd [#allocation3], 4294967168 }
  0x48   :  { %3504 = dma.done.wait [#allocation6], 32768  }
  0x49   :  { %3505 = vsyncadd [#allocation6], 4294934528 }
  0x4a   :  { %3506 = dma.done.wait [#allocation9], 6144  }
  0x4b   :  { %3507 = vsyncadd [#allocation9], 4294961152  ;;  %v2960_v0 = vld [vmem:[#allocation5 + $0x4] ss:$16 sps:$4 sm:$0xff]   ;;  %v2962_v1 = vld [vmem:[#allocation5] ss:$16 sps:$4 sm:$0xff]  }
  0x4c   :  { %496 = vmatprep.subr.bf16.mxu0 %v2960_v0  ;;  %v2963_v2 = vld [vmem:[#allocation5 + $0x24] ss:$16 sps:$4 sm:$0xff]   ;;  %v2965_v3 = vld [vmem:[#allocation5 + $0x20] ss:$16 sps:$4 sm:$0xff]   ;;  %v3008_v14 = vld [vmem:[#allocation5 + $0xc] ss:$16 sps:$4 sm:$0xff]  }
  0x4d   :  { %497 = vmatpush1.bf16.msra.mxu0 %v2962_v1  ;;  %v2966_v4 = vld [vmem:[#allocation5 + $0x44] ss:$16 sps:$4 sm:$0xff]   ;;  %v2968_v5 = vld [vmem:[#allocation5 + $0x40] ss:$16 sps:$4 sm:$0xff]   ;;  %v3010_v15 = vld [vmem:[#allocation5 + $0x8] ss:$16 sps:$4 sm:$0xff]   ;;  %537 = vmatprep.subr.bf16.mxu1 %v3008_v14 }
  0x4e   :  { %498 = vmatprep.subr.bf16.mxu0 %v2963_v2  ;;  %v2969_v6 = vld [vmem:[#allocation5 + $0x64] ss:$16 sps:$4 sm:$0xff]   ;;  %v2971_v7 = vld [vmem:[#allocation5 + $0x60] ss:$16 sps:$4 sm:$0xff]   ;;  %v81_v16 = vld [vmem:[#allocation2] sm:$0xff]  ;;  %v3520_v17 = vmov 0   ;;  %538 = vmatpush1.bf16.msra.mxu1 %v3010_v15 }
  0x4f   :  { %v2972_v8 = vld [vmem:[#allocation5 + $0x84] ss:$16 sps:$4 sm:$0xff]   ;;  %v2974_v9 = vld [vmem:[#allocation5 + $0x80] ss:$16 sps:$4 sm:$0xff]   ;;  %v3610_v18 = vmax.bf16 %v3520_v17, %v81_v16  ;;  %v3011_v19 = vld [vmem:[#allocation5 + $0x2c] ss:$16 sps:$4 sm:$0xff]  }
  0x50   :  { %v2975_v10 = vld [vmem:[#allocation5 + $0xa4] ss:$16 sps:$4 sm:$0xff]   ;;  %v2977_v11 = vld [vmem:[#allocation5 + $0xa0] ss:$16 sps:$4 sm:$0xff]   ;;  %v3013_v22 = vld [vmem:[#allocation5 + $0x28] ss:$16 sps:$4 sm:$0xff]   ;;  %539 = vmatprep.subr.bf16.mxu1 %v3011_v19 }
  0x51   :  { %499 = vmatpush1.bf16.msra.mxu0 %v2965_v3  ;;  %v2978_v12 = vld [vmem:[#allocation5 + $0xc4] ss:$16 sps:$4 sm:$0xff]   ;;  %v2980_v13 = vld [vmem:[#allocation5 + $0xc0] ss:$16 sps:$4 sm:$0xff]   ;;  %v2558_v21 = vcombine.high %v3610_v18, %v3610_v18  ;;  %v3014_v23 = vld [vmem:[#allocation5 + $0x4c] ss:$16 sps:$4 sm:$0xff]   ;;  %v2557_v59 = vcombine.low %v3610_v18, %v3610_v18 }
  0x52   :  { %500 = vmatprep.subr.bf16.mxu0 %v2966_v4  ;;  %v2981_v20 = vld [vmem:[#allocation5 + $0xe4] ss:$16 sps:$4 sm:$0xff]   ;;  %v2983_v24 = vld [vmem:[#allocation5 + $0xe0] ss:$16 sps:$4 sm:$0xff]   ;;  %540 = vmatpush1.bf16.msra.mxu1 %v3013_v22  ;;  %v3016_v26 = vld [vmem:[#allocation5 + $0x48] ss:$16 sps:$4 sm:$0xff]  }
  0x53   :  { %528 = vmatprep.mubr.bf16.mxu0 %v2558_v21  ;;  %v2984_v25 = vld [vmem:[#allocation5 + $0x104] ss:$16 sps:$4 sm:$0xff]   ;;  %569 = vmatprep.mubr.bf16.mxu1 %v2558_v21  ;;  %v3017_v27 = vld [vmem:[#allocation5 + $0x6c] ss:$16 sps:$4 sm:$0xff]   ;;  %v2986_v28 = vld [vmem:[#allocation5 + $0x100] ss:$16 sps:$4 sm:$0xff]  }
  0x54   :  { %541 = vmatprep.subr.bf16.mxu1 %v3014_v23  ;;  %v2987_v29 = vld [vmem:[#allocation5 + $0x124] ss:$16 sps:$4 sm:$0xff]   ;;  %v3019_v30 = vld [vmem:[#allocation5 + $0x68] ss:$16 sps:$4 sm:$0xff]   ;;  %v3020_v31 = vld [vmem:[#allocation5 + $0x8c] ss:$16 sps:$4 sm:$0xff]  }
  0x55   :  { %501 = vmatpush1.bf16.msra.mxu0 %v2968_v5  ;;  %v2989_v32 = vld [vmem:[#allocation5 + $0x120] ss:$16 sps:$4 sm:$0xff]   ;;  %v2990_v33 = vld [vmem:[#allocation5 + $0x144] ss:$16 sps:$4 sm:$0xff]   ;;  %v3022_v34 = vld [vmem:[#allocation5 + $0x88] ss:$16 sps:$4 sm:$0xff]  }
  0x56   :  { %502 = vmatprep.subr.bf16.mxu0 %v2969_v6  ;;  %542 = vmatpush1.bf16.msra.mxu1 %v3016_v26  ;;  %v3023_v35 = vld [vmem:[#allocation5 + $0xac] ss:$16 sps:$4 sm:$0xff]   ;;  %v2992_v36 = vld [vmem:[#allocation5 + $0x140] ss:$16 sps:$4 sm:$0xff]   ;;  %v2993_v37 = vld [vmem:[#allocation5 + $0x164] ss:$16 sps:$4 sm:$0xff]  }
  0x57   :  { %543 = vmatprep.subr.bf16.mxu1 %v3017_v27  ;;  %v3025_v38 = vld [vmem:[#allocation5 + $0xa8] ss:$16 sps:$4 sm:$0xff]   ;;  %v3026_v39 = vld [vmem:[#allocation5 + $0xcc] ss:$16 sps:$4 sm:$0xff]   ;;  %v2995_v40 = vld [vmem:[#allocation5 + $0x160] ss:$16 sps:$4 sm:$0xff]  }
  0x58   :  { %v2996_v41 = vld [vmem:[#allocation5 + $0x184] ss:$16 sps:$4 sm:$0xff]   ;;  %v3028_v42 = vld [vmem:[#allocation5 + $0xc8] ss:$16 sps:$4 sm:$0xff]   ;;  %v3029_v43 = vld [vmem:[#allocation5 + $0xec] ss:$16 sps:$4 sm:$0xff]  }
  0x59   :  { %503 = vmatpush1.bf16.msra.mxu0 %v2971_v7  ;;  %v2998_v44 = vld [vmem:[#allocation5 + $0x180] ss:$16 sps:$4 sm:$0xff]   ;;  %v2999_v45 = vld [vmem:[#allocation5 + $0x1a4] ss:$16 sps:$4 sm:$0xff]   ;;  %v3031_v46 = vld [vmem:[#allocation5 + $0xe8] ss:$16 sps:$4 sm:$0xff]  }
  0x5a   :  { %504 = vmatprep.subr.bf16.mxu0 %v2972_v8  ;;  %544 = vmatpush1.bf16.msra.mxu1 %v3019_v30  ;;  %v3032_v47 = vld [vmem:[#allocation5 + $0x10c] ss:$16 sps:$4 sm:$0xff]   ;;  %v3001_v48 = vld [vmem:[#allocation5 + $0x1a0] ss:$16 sps:$4 sm:$0xff]   ;;  %v3002_v49 = vld [vmem:[#allocation5 + $0x1c4] ss:$16 sps:$4 sm:$0xff]  }
  0x5b   :  { %545 = vmatprep.subr.bf16.mxu1 %v3020_v31  ;;  %v3034_v50 = vld [vmem:[#allocation5 + $0x108] ss:$16 sps:$4 sm:$0xff]   ;;  %v3035_v51 = vld [vmem:[#allocation5 + $0x12c] ss:$16 sps:$4 sm:$0xff]   ;;  %v3004_v52 = vld [vmem:[#allocation5 + $0x1c0] ss:$16 sps:$4 sm:$0xff]  }
  0x5c   :  { %v3005_v53 = vld [vmem:[#allocation5 + $0x1e4] ss:$16 sps:$4 sm:$0xff]   ;;  %v3037_v54 = vld [vmem:[#allocation5 + $0x128] ss:$16 sps:$4 sm:$0xff]   ;;  %v3038_v55 = vld [vmem:[#allocation5 + $0x14c] ss:$16 sps:$4 sm:$0xff]  }
  0x5d   :  { %505 = vmatpush1.bf16.msra.mxu0 %v2974_v9  ;;  %v3007_v56 = vld [vmem:[#allocation5 + $0x1e0] ss:$16 sps:$4 sm:$0xff]   ;;  %v3058_v57 = vld [vmem:[#allocation7 + $0x4] ss:$24 sps:$4 sm:$0xff]   ;;  %v3040_v58 = vld [vmem:[#allocation5 + $0x148] ss:$16 sps:$4 sm:$0xff]  }
  0x5e   :  { %506 = vmatprep.subr.bf16.mxu0 %v2975_v10  ;;  %546 = vmatpush1.bf16.msra.mxu1 %v3022_v34  ;;  %v3041_v60 = vld [vmem:[#allocation5 + $0x16c] ss:$16 sps:$4 sm:$0xff]   ;;  %v3056_v61 = vld [vmem:[#allocation7] ss:$24 sps:$4 sm:$0xff]   ;;  %v3062_v1 = vld [vmem:[#allocation7 + $0x30] ss:$24 sps:$4 sm:$0xff]  }
  0x5f   :  { %547 = vmatprep.subr.bf16.mxu1 %v3023_v35  ;;  %v3064_v62 = vld [vmem:[#allocation7 + $0x34] ss:$24 sps:$4 sm:$0xff]   ;;  %v3043_v63 = vld [vmem:[#allocation5 + $0x168] ss:$16 sps:$4 sm:$0xff]   ;;  %v3070_v2 = vld [vmem:[#allocation7 + $0x64] ss:$24 sps:$4 sm:$0xff]  }
  0x60   :  { %v3044_v0 = vld [vmem:[#allocation5 + $0x18c] ss:$16 sps:$4 sm:$0xff]   ;;  %v3046_v3 = vld [vmem:[#allocation5 + $0x188] ss:$16 sps:$4 sm:$0xff]   ;;  %s3521_s8 = smov [#allocation10]  }
  0x61   :  { %507 = vmatpush1.bf16.msra.mxu0 %v2977_v11  ;;  %v3047_v4 = vld [vmem:[#allocation5 + $0x1ac] ss:$16 sps:$4 sm:$0xff]   ;;  %v3068_v5 = vld [vmem:[#allocation7 + $0x60] ss:$24 sps:$4 sm:$0xff]   ;;  %v3074_v9 = vld [vmem:[#allocation7 + $0x90] ss:$24 sps:$4 sm:$0xff]  }
  0x62   :  { %508 = vmatprep.subr.bf16.mxu0 %v2978_v12  ;;  %548 = vmatpush1.bf16.msra.mxu1 %v3025_v38  ;;  %v3076_v6 = vld [vmem:[#allocation7 + $0x94] ss:$24 sps:$4 sm:$0xff]   ;;  %v3049_v7 = vld [vmem:[#allocation5 + $0x1a8] ss:$16 sps:$4 sm:$0xff]   ;;  %v3082_v10 = vld [vmem:[#allocation7 + $0xc4] ss:$24 sps:$4 sm:$0xff]  }
  0x63   :  { %549 = vmatprep.subr.bf16.mxu1 %v3026_v39  ;;  %v3050_v8 = vld [vmem:[#allocation5 + $0x1cc] ss:$16 sps:$4 sm:$0xff]   ;;  %v3052_v11 = vld [vmem:[#allocation5 + $0x1c8] ss:$16 sps:$4 sm:$0xff]   ;;  %s2546_s9 = sshll.u32 %s3521_s8, 4  ;;  %s2547_s9 = int_to_ptr.vmem [resolvable:$true] %s2546_s9 }
  0x64   :  { %v3053_v12 = vld [vmem:[#allocation5 + $0x1ec] ss:$16 sps:$4 sm:$0xff]   ;;  %v3080_v14 = vld [vmem:[#allocation7 + $0xc0] ss:$24 sps:$4 sm:$0xff]   ;;  %v3086_v17 = vld [vmem:[#allocation7 + $0xf0] ss:$24 sps:$4 sm:$0xff]   ;;  %p3485_p5 = scmp.lt.s32.totalorder %s2547_s9, %s2547_s9 }
  0x65   :  { %509 = vmatpush1.bf16.msra.mxu0 %v2980_v13  ;;  %v3055_v13 = vld [vmem:[#allocation5 + $0x1e8] ss:$16 sps:$4 sm:$0xff]   ;;  %v3061_v15 = vld [vmem:[#allocation7 + $0xc] ss:$24 sps:$4 sm:$0xff]   ;;  %s3480_s10 = scalar_lea.vmem %s2547_s9, 128 }
  0x66   :  { %510 = vmatprep.subr.bf16.mxu0 %v2981_v20  ;;  %550 = vmatpush1.bf16.msra.mxu1 %v3028_v42  ;;  %v3088_v16 = vld [vmem:[#allocation7 + $0xf4] ss:$24 sps:$4 sm:$0xff]   ;;  %v3094_v18 = vld [vmem:[#allocation7 + $0x124] ss:$24 sps:$4 sm:$0xff]   ;;  %v3059_v19 = vld [vmem:[#allocation7 + $0x8] ss:$24 sps:$4 sm:$0xff]   ;;  %p3481_p4 = scmp.ne.s32.totalorder %s2547_s9, %s3480_s10  ;;  %p3486_p6 = scmp.lt.s32.totalorder %s3480_s10, %s3480_s10 }
  0x67   :  { %551 = vmatprep.subr.bf16.mxu1 %v3029_v43  ;;  %v3067_v20 = vld [vmem:[#allocation7 + $0x3c] ss:$24 sps:$4 sm:$0xff]   ;;  %v3092_v21 = vld [vmem:[#allocation7 + $0x120] ss:$24 sps:$4 sm:$0xff]  }
  0x68   :  { %v3100_v22 = vld [vmem:[#allocation7 + $0x154] ss:$24 sps:$4 sm:$0xff]   ;;  %v3065_v23 = vld [vmem:[#allocation7 + $0x38] ss:$24 sps:$4 sm:$0xff]   ;;  %v3106_v26 = vld [vmem:[#allocation7 + $0x184] ss:$24 sps:$4 sm:$0xff]   ;;  %p3487_p7 = por %p3486_p6, %p3485_p5 }
  0x69   :  { %511 = vmatpush1.bf16.msra.mxu0 %v2983_v24  ;;  %v3073_v24 = vld [vmem:[#allocation7 + $0x6c] ss:$24 sps:$4 sm:$0xff]   ;;  %v3071_v27 = vld [vmem:[#allocation7 + $0x68] ss:$24 sps:$4 sm:$0xff]   ;;  %v3077_v31 = vld [vmem:[#allocation7 + $0x98] ss:$24 sps:$4 sm:$0xff]  }
  0x6a   :  { %512 = vmatprep.subr.bf16.mxu0 %v2984_v25  ;;  %552 = vmatpush1.bf16.msra.mxu1 %v3031_v46  ;;  %v3098_v25 = vld [vmem:[#allocation7 + $0x150] ss:$24 sps:$4 sm:$0xff]   ;;  %v3112_v30 = vld [vmem:[#allocation7 + $0x1b4] ss:$24 sps:$4 sm:$0xff]   ;;  %v3118_v34 = vld [vmem:[#allocation7 + $0x1e4] ss:$24 sps:$4 sm:$0xff]   ;;  %p3488_p8 = pnand %p3487_p7, %p3481_p4 }
  0x6b   :  { %553 = vmatprep.subr.bf16.mxu1 %v3032_v47  ;;  %v3083_v35 = vld [vmem:[#allocation7 + $0xc8] ss:$24 sps:$4 sm:$0xff]   ;;  %v3124_v38 = vld [vmem:[#allocation7 + $0x214] ss:$24 sps:$4 sm:$0xff]   ;;  %v3089_v39 = vld [vmem:[#allocation7 + $0xf8] ss:$24 sps:$4 sm:$0xff]  }
  0x6c   :  { %v3130_v42 = vld [vmem:[#allocation7 + $0x244] ss:$24 sps:$4 sm:$0xff]   ;;  %v3095_v43 = vld [vmem:[#allocation7 + $0x128] ss:$24 sps:$4 sm:$0xff]   ;;  %v3136_v46 = vld [vmem:[#allocation7 + $0x274] ss:$24 sps:$4 sm:$0xff]  }
  0x6d   :  { %513 = vmatpush1.bf16.msra.mxu0 %v2986_v28  ;;  %v3079_v28 = vld [vmem:[#allocation7 + $0x9c] ss:$24 sps:$4 sm:$0xff]   ;;  %v3101_v47 = vld [vmem:[#allocation7 + $0x158] ss:$24 sps:$4 sm:$0xff]  }
  0x6e   :  { %514 = vmatprep.subr.bf16.mxu0 %v2987_v29  ;;  %554 = vmatpush1.bf16.msra.mxu1 %v3034_v50  ;;  %v3104_v29 = vld [vmem:[#allocation7 + $0x180] ss:$24 sps:$4 sm:$0xff]  }
  0x6f   :  { %555 = vmatprep.subr.bf16.mxu1 %v3035_v51  ;;  %v3107_v50 = vld [vmem:[#allocation7 + $0x188] ss:$24 sps:$4 sm:$0xff]   ;;  %v3115_v51 = vld [vmem:[#allocation7 + $0x1bc] ss:$24 sps:$4 sm:$0xff]  }
  0x71   :  { %515 = vmatpush1.bf16.msra.mxu0 %v2989_v32  ;;  %v3085_v32 = vld [vmem:[#allocation7 + $0xcc] ss:$24 sps:$4 sm:$0xff]  }
  0x72   :  { %516 = vmatprep.subr.bf16.mxu0 %v2990_v33  ;;  %556 = vmatpush1.bf16.msra.mxu1 %v3037_v54  ;;  %v3110_v33 = vld [vmem:[#allocation7 + $0x1b0] ss:$24 sps:$4 sm:$0xff]  }
  0x73   :  { %557 = vmatprep.subr.bf16.mxu1 %v3038_v55  ;;  %v3119_v54 = vld [vmem:[#allocation7 + $0x1e8] ss:$24 sps:$4 sm:$0xff]   ;;  %v3127_v55 = vld [vmem:[#allocation7 + $0x21c] ss:$24 sps:$4 sm:$0xff]  }
  0x75   :  { %517 = vmatpush1.bf16.msra.mxu0 %v2992_v36  ;;  %v3091_v36 = vld [vmem:[#allocation7 + $0xfc] ss:$24 sps:$4 sm:$0xff]  }
  0x76   :  { %518 = vmatprep.subr.bf16.mxu0 %v2993_v37  ;;  %558 = vmatpush1.bf16.msra.mxu1 %v3040_v58  ;;  %v3116_v37 = vld [vmem:[#allocation7 + $0x1e0] ss:$24 sps:$4 sm:$0xff]  }
  0x77   :  { %559 = vmatprep.subr.bf16.mxu1 %v3041_v60  ;;  %v3131_v58 = vld [vmem:[#allocation7 + $0x248] ss:$24 sps:$4 sm:$0xff]   ;;  %v3137_v60 = vld [vmem:[#allocation7 + $0x278] ss:$24 sps:$4 sm:$0xff]  }
  0x79   :  { %519 = vmatpush1.bf16.msra.mxu0 %v2995_v40  ;;  %v3097_v40 = vld [vmem:[#allocation7 + $0x12c] ss:$24 sps:$4 sm:$0xff]  }
  0x7a   :  { %520 = vmatprep.subr.bf16.mxu0 %v2996_v41  ;;  %560 = vmatpush1.bf16.msra.mxu1 %v3043_v63  ;;  %v3122_v41 = vld [vmem:[#allocation7 + $0x210] ss:$24 sps:$4 sm:$0xff]   ;;  %v3140_v63 = vld [vmem:[#allocation7 + $0x2a0] ss:$24 sps:$4 sm:$0xff]  }
  0x7b   :  { %561 = vmatprep.subr.bf16.mxu1 %v3044_v0  ;;  %v3143_v0 = vld [vmem:[#allocation7 + $0x2a8] ss:$24 sps:$4 sm:$0xff]  }
  0x7d   :  { %521 = vmatpush1.bf16.msra.mxu0 %v2998_v44  ;;  %v3103_v44 = vld [vmem:[#allocation7 + $0x15c] ss:$24 sps:$4 sm:$0xff]  }
  0x7e   :  { %522 = vmatprep.subr.bf16.mxu0 %v2999_v45  ;;  %562 = vmatpush1.bf16.msra.mxu1 %v3046_v3  ;;  %v3128_v45 = vld [vmem:[#allocation7 + $0x240] ss:$24 sps:$4 sm:$0xff]   ;;  %v3146_v3 = vld [vmem:[#allocation7 + $0x2d0] ss:$24 sps:$4 sm:$0xff]  }
  0x7f   :  { %563 = vmatprep.subr.bf16.mxu1 %v3047_v4  ;;  %v3149_v4 = vld [vmem:[#allocation7 + $0x2d8] ss:$24 sps:$4 sm:$0xff]  }
  0x81   :  { %523 = vmatpush1.bf16.msra.mxu0 %v3001_v48  ;;  %v3109_v48 = vld [vmem:[#allocation7 + $0x18c] ss:$24 sps:$4 sm:$0xff]  }
  0x82   :  { %524 = vmatprep.subr.bf16.mxu0 %v3002_v49  ;;  %564 = vmatpush1.bf16.msra.mxu1 %v3049_v7  ;;  %v3134_v49 = vld [vmem:[#allocation7 + $0x270] ss:$24 sps:$4 sm:$0xff]   ;;  %v149_v7 = vlaneseq }
  0x83   :  { %565 = vmatprep.subr.bf16.mxu1 %v3050_v8 }
  0x84   :  { %v3616_v8 = vshrl.u32 %v149_v7, 7  ;;  %v3214_v7 = vld [vmem:[#allocation7 + $0x4e4] ss:$24 sps:$4 sm:$0xff]  }
  0x85   :  { %525 = vmatpush1.bf16.msra.mxu0 %v3004_v52  ;;  %v3113_v52 = vld [vmem:[#allocation7 + $0x1b8] ss:$24 sps:$4 sm:$0xff]  }
  0x86   :  { %526 = vmatprep.subr.bf16.mxu0 %v3005_v53  ;;  %566 = vmatpush1.bf16.msra.mxu1 %v3052_v11  ;;  %v3121_v53 = vld [vmem:[#allocation7 + $0x1ec] ss:$24 sps:$4 sm:$0xff]   ;;  %v155_v11 = vsub.s32 1, %v3616_v8 }
  0x87   :  { %567 = vmatprep.subr.bf16.mxu1 %v3053_v12 }
  0x89   :  { %527 = vmatpush1.bf16.msra.mxu0 %v3007_v56  ;;  %v3125_v56 = vld [vmem:[#allocation7 + $0x218] ss:$24 sps:$4 sm:$0xff]  }
  0x8a   :  { %1770 = vmatprep.subr.bf16.mxu0 %v3058_v57  ;;  %568 = vmatpush1.bf16.msra.mxu1 %v3055_v13  ;;  %v3133_v57 = vld [vmem:[#allocation7 + $0x24c] ss:$24 sps:$4 sm:$0xff]  }
  0x8b   :  { %1852 = vmatprep.subr.bf16.mxu1 %v3061_v15 }
  0x8c   :  { %529 = vmatmul.mubr.bf16.vlgmr.msra.gmra.mrb[0].mxu0 %v2557_v59 }
  0x8d   :  { %1771 = vmatpush1.bf16.msra.mxu0 %v3056_v61  ;;  %570 = vmatmul.mubr.bf16.vlgmr.msra.gmra.mrb[0].mxu1 %v2557_v59  ;;  %v3139_v59 = vld [vmem:[#allocation7 + $0x27c] ss:$24 sps:$4 sm:$0xff]  }
  0x8e   :  { %1772 = vmatprep.subr.bf16.mxu0 %v3064_v62  ;;  %1853 = vmatpush1.bf16.msra.mxu1 %v3059_v19  ;;  %v3142_v61 = vld [vmem:[#allocation7 + $0x2a4] ss:$24 sps:$4 sm:$0xff]  }
  0x8f   :  { %1854 = vmatprep.subr.bf16.mxu1 %v3067_v20  ;;  %v3145_v62 = vld [vmem:[#allocation7 + $0x2ac] ss:$24 sps:$4 sm:$0xff]  }
  0x91   :  { %1773 = vmatpush1.bf16.msra.mxu0 %v3062_v1  ;;  %v3148_v1 = vld [vmem:[#allocation7 + $0x2d4] ss:$24 sps:$4 sm:$0xff]  }
  0x92   :  { %1774 = vmatprep.subr.bf16.mxu0 %v3070_v2  ;;  %1855 = vmatpush1.bf16.msra.mxu1 %v3065_v23  ;;  %v3151_v2 = vld [vmem:[#allocation7 + $0x2dc] ss:$24 sps:$4 sm:$0xff]   ;;  %v3152_v23 = vld [vmem:[#allocation7 + $0x300] ss:$24 sps:$4 sm:$0xff]  }
  0x93   :  { %1856 = vmatprep.subr.bf16.mxu1 %v3073_v24  ;;  %v3155_v24 = vld [vmem:[#allocation7 + $0x308] ss:$24 sps:$4 sm:$0xff]  }
  0x95   :  { %1775 = vmatpush1.bf16.msra.mxu0 %v3068_v5  ;;  %v3154_v5 = vld [vmem:[#allocation7 + $0x304] ss:$24 sps:$4 sm:$0xff]  }
  0x96   :  { %1776 = vmatprep.subr.bf16.mxu0 %v3076_v6  ;;  %1857 = vmatpush1.bf16.msra.mxu1 %v3071_v27  ;;  %v3157_v6 = vld [vmem:[#allocation7 + $0x30c] ss:$24 sps:$4 sm:$0xff]   ;;  %v3163_v27 = vld [vmem:[#allocation7 + $0x33c] ss:$24 sps:$4 sm:$0xff]  }
  0x97   :  { %1858 = vmatprep.subr.bf16.mxu1 %v3079_v28  ;;  %v3158_v28 = vld [vmem:[#allocation7 + $0x330] ss:$24 sps:$4 sm:$0xff]  }
  0x99   :  { %1777 = vmatpush1.bf16.msra.mxu0 %v3074_v9  ;;  %v151_v9 = vsub.s32 0, %v3616_v8 }
  0x9a   :  { %1778 = vmatprep.subr.bf16.mxu0 %v3082_v10  ;;  %1859 = vmatpush1.bf16.msra.mxu1 %v3077_v31  ;;  %v3622_v10 = vld [vmem:[%s3700_s2] sm:$0xf]  ;;  %v3169_v31 = vld [vmem:[#allocation7 + $0x36c] ss:$24 sps:$4 sm:$0xff]  }
  0x9b   :  { %1860 = vmatprep.subr.bf16.mxu1 %v3085_v32  ;;  %v152_v12 = vrot.slane %v3622_v10, %v151_v9  ;;  %v156_v13 = vrot.slane %v3622_v10, %v155_v11  ;;  %v3164_v32 = vld [vmem:[#allocation7 + $0x360] ss:$24 sps:$4 sm:$0xff]  }
  0x9d   :  { %1779 = vmatpush1.bf16.msra.mxu0 %v3080_v14 }
  0x9e   :  { %1780 = vmatprep.subr.bf16.mxu0 %v3088_v16  ;;  %1861 = vmatpush1.bf16.msra.mxu1 %v3083_v35  ;;  %v3175_v35 = vld [vmem:[#allocation7 + $0x39c] ss:$24 sps:$4 sm:$0xff]  }
  0x9f   :  { %1862 = vmatprep.subr.bf16.mxu1 %v3091_v36  ;;  %v163_v36 = vsub.s32 3, %v3616_v8 }
  0xa1   :  { %1781 = vmatpush1.bf16.msra.mxu0 %v3086_v17 }
  0xa2   :  { %1782 = vmatprep.subr.bf16.mxu0 %v3094_v18  ;;  %1863 = vmatpush1.bf16.msra.mxu1 %v3089_v39  ;;  %v3178_v39 = vld [vmem:[#allocation7 + $0x3c4] ss:$24 sps:$4 sm:$0xff]  }
  0xa3   :  { %1864 = vmatprep.subr.bf16.mxu1 %v3097_v40  ;;  %v3181_v40 = vld [vmem:[#allocation7 + $0x3cc] ss:$24 sps:$4 sm:$0xff]  }
  0xa5   :  { %1783 = vmatpush1.bf16.msra.mxu0 %v3092_v21 }
  0xa6   :  { %1784 = vmatprep.subr.bf16.mxu0 %v3100_v22  ;;  %1865 = vmatpush1.bf16.msra.mxu1 %v3095_v43  ;;  %v3179_v43 = vld [vmem:[#allocation7 + $0x3c8] ss:$24 sps:$4 sm:$0xff]  }
  0xa7   :  { %1866 = vmatprep.subr.bf16.mxu1 %v3103_v44 }
  0xa9   :  { %1785 = vmatpush1.bf16.msra.mxu0 %v3098_v25 }
  0xaa   :  { %1786 = vmatprep.subr.bf16.mxu0 %v3106_v26  ;;  %1867 = vmatpush1.bf16.msra.mxu1 %v3101_v47  ;;  %v3160_v26 = vld [vmem:[#allocation7 + $0x334] ss:$24 sps:$4 sm:$0xff]  }
  0xab   :  { %1868 = vmatprep.subr.bf16.mxu1 %v3109_v48 }
  0xad   :  { %1787 = vmatpush1.bf16.msra.mxu0 %v3104_v29  ;;  %v3161_v29 = vld [vmem:[#allocation7 + $0x338] ss:$24 sps:$4 sm:$0xff]  }
  0xae   :  { %1788 = vmatprep.subr.bf16.mxu0 %v3112_v30  ;;  %1869 = vmatpush1.bf16.msra.mxu1 %v3107_v50  ;;  %v3166_v30 = vld [vmem:[#allocation7 + $0x364] ss:$24 sps:$4 sm:$0xff]  }
  0xaf   :  { %1870 = vmatprep.subr.bf16.mxu1 %v3115_v51  ;;  %v3182_v51 = vld [vmem:[#allocation7 + $0x3f0] ss:$24 sps:$4 sm:$0xff]  }
  0xb1   :  { %1789 = vmatpush1.bf16.msra.mxu0 %v3110_v33  ;;  %v3167_v33 = vld [vmem:[#allocation7 + $0x368] ss:$24 sps:$4 sm:$0xff]  }
  0xb2   :  { %1790 = vmatprep.subr.bf16.mxu0 %v3118_v34  ;;  %1871 = vmatpush1.bf16.msra.mxu1 %v3113_v52  ;;  %v3172_v34 = vld [vmem:[#allocation7 + $0x394] ss:$24 sps:$4 sm:$0xff]   ;;  %v3185_v52 = vld [vmem:[#allocation7 + $0x3f8] ss:$24 sps:$4 sm:$0xff]  }
  0xb3   :  { %1872 = vmatprep.subr.bf16.mxu1 %v3121_v53 }
  0xb5   :  { %1791 = vmatpush1.bf16.msra.mxu0 %v3116_v37  ;;  %v3170_v37 = vld [vmem:[#allocation7 + $0x390] ss:$24 sps:$4 sm:$0xff]  }
  0xb6   :  { %1792 = vmatprep.subr.bf16.mxu0 %v3124_v38  ;;  %1873 = vmatpush1.bf16.msra.mxu1 %v3119_v54  ;;  %v3173_v38 = vld [vmem:[#allocation7 + $0x398] ss:$24 sps:$4 sm:$0xff]   ;;  %v3190_v54 = vld [vmem:[#allocation7 + $0x424] ss:$24 sps:$4 sm:$0xff]  }
  0xb7   :  { %1874 = vmatprep.subr.bf16.mxu1 %v3127_v55  ;;  %v3193_v55 = vld [vmem:[#allocation7 + $0x42c] ss:$24 sps:$4 sm:$0xff]  }
  0xb9   :  { %1793 = vmatpush1.bf16.msra.mxu0 %v3122_v41  ;;  %v164_v41 = vrot.slane %v3622_v10, %v163_v36 }
  0xba   :  { %1794 = vmatprep.subr.bf16.mxu0 %v3130_v42  ;;  %1875 = vmatpush1.bf16.msra.mxu1 %v3125_v56  ;;  %v3176_v42 = vld [vmem:[#allocation7 + $0x3c0] ss:$24 sps:$4 sm:$0xff]  }
  0xbb   :  { %1876 = vmatprep.subr.bf16.mxu1 %v3133_v57  ;;  %v3188_v57 = vld [vmem:[#allocation7 + $0x420] ss:$24 sps:$4 sm:$0xff]  }
  0xbd   :  { %1795 = vmatpush1.bf16.msra.mxu0 %v3128_v45  ;;  %v3184_v45 = vld [vmem:[#allocation7 + $0x3f4] ss:$24 sps:$4 sm:$0xff]  }
  0xbe   :  { %1796 = vmatprep.subr.bf16.mxu0 %v3136_v46  ;;  %1877 = vmatpush1.bf16.msra.mxu1 %v3131_v58  ;;  %v3187_v46 = vld [vmem:[#allocation7 + $0x3fc] ss:$24 sps:$4 sm:$0xff]   ;;  %v3191_v58 = vld [vmem:[#allocation7 + $0x428] ss:$24 sps:$4 sm:$0xff]  }
  0xbf   :  { %1878 = vmatprep.subr.bf16.mxu1 %v3139_v59  ;;  %v3196_v59 = vld [vmem:[#allocation7 + $0x454] ss:$24 sps:$4 sm:$0xff]  }
  0xc1   :  { %1797 = vmatpush1.bf16.msra.mxu0 %v3134_v49 }
  0xc2   :  { %1879 = vmatpush1.bf16.msra.mxu1 %v3137_v60  ;;  %1798 = vmatprep.subr.bf16.mxu0 %v3142_v61  ;;  %v3199_v60 = vld [vmem:[#allocation7 + $0x45c] ss:$24 sps:$4 sm:$0xff]   ;;  %v3194_v61 = vld [vmem:[#allocation7 + $0x450] ss:$24 sps:$4 sm:$0xff]  }
  0xc3   :  { %1880 = vmatprep.subr.bf16.mxu1 %v3145_v62  ;;  %v3197_v62 = vld [vmem:[#allocation7 + $0x458] ss:$24 sps:$4 sm:$0xff]  }
  0xc5   :  { %1799 = vmatpush1.bf16.msra.mxu0 %v3140_v63  ;;  %v3202_v63 = vld [vmem:[#allocation7 + $0x484] ss:$24 sps:$4 sm:$0xff]  }
  0xc6   :  { %1881 = vmatpush1.bf16.msra.mxu1 %v3143_v0  ;;  %1800 = vmatprep.subr.bf16.mxu0 %v3148_v1  ;;  %v3205_v0 = vld [vmem:[#allocation7 + $0x48c] ss:$24 sps:$4 sm:$0xff]   ;;  %v3200_v1 = vld [vmem:[#allocation7 + $0x480] ss:$24 sps:$4 sm:$0xff]  }
  0xc7   :  { %1882 = vmatprep.subr.bf16.mxu1 %v3151_v2  ;;  %v3203_v2 = vld [vmem:[#allocation7 + $0x488] ss:$24 sps:$4 sm:$0xff]  }
  0xc9   :  { %1801 = vmatpush1.bf16.msra.mxu0 %v3146_v3  ;;  %v3208_v3 = vld [vmem:[#allocation7 + $0x4b4] ss:$24 sps:$4 sm:$0xff]  }
  0xca   :  { %1883 = vmatpush1.bf16.msra.mxu1 %v3149_v4  ;;  %1811 = vmatprep.subr.bf16.mxu0 %v3154_v5  ;;  %v3211_v4 = vld [vmem:[#allocation7 + $0x4bc] ss:$24 sps:$4 sm:$0xff]   ;;  %v3206_v5 = vld [vmem:[#allocation7 + $0x4b0] ss:$24 sps:$4 sm:$0xff]  }
  0xcb   :  { %1893 = vmatprep.subr.bf16.mxu1 %v3157_v6  ;;  %v3209_v6 = vld [vmem:[#allocation7 + $0x4b8] ss:$24 sps:$4 sm:$0xff]  }
 0x15f   :  { %v530_v14 = vpop.f32.mrb[0].mxu0 }
 0x160   :  { %v531_v15 = vadd.f32 %v530_v14, %v152_v12  ;;  %v532_v16 = vpop.f32.mrb[1].mxu0  ;;  %v3643_v44 = vpop.f32.mrb[0].mxu1  ;;  %v3217_v12 = vld [vmem:[#allocation7 + $0x4ec] ss:$24 sps:$4 sm:$0xff]   ;;  %v3215_v14 = vld [vmem:[#allocation7 + $0x4e8] ss:$24 sps:$4 sm:$0xff]  }
 0x161   :  { %v533_v17 = vadd.f32 %v532_v16, %v156_v13  ;;  %v534_v18 = vpop.f32.mrb[2].mxu0  ;;  %v573_v47 = vpop.f32.mrb[1].mxu1  ;;  %v3212_v13 = vld [vmem:[#allocation7 + $0x4e0] ss:$24 sps:$4 sm:$0xff]   ;;  %v3223_v16 = vld [vmem:[#allocation7 + $0x51c] ss:$24 sps:$4 sm:$0xff]  }
 0x162   :  { %v578_v19 = vmax.f32 %v531_v15, 0.0  ;;  %v535_v20 = vpop.f32.mrb[3].mxu0  ;;  %v574_v48 = vadd.f32 %v573_v47, %v164_v41  ;;  %v575_v49 = vpop.f32.mrb[2].mxu1  ;;  %v3220_v15 = vld [vmem:[#allocation7 + $0x514] ss:$24 sps:$4 sm:$0xff]  }
 0x163   :  { %v579_v21 = vmax.f32 %v533_v17, 0.0  ;;  %v576_v50 = vpop.f32.mrb[3].mxu1  ;;  %v3218_v17 = vld [vmem:[#allocation7 + $0x510] ss:$24 sps:$4 sm:$0xff]   ;;  %v3229_v20 = vld [vmem:[#allocation7 + $0x54c] ss:$24 sps:$4 sm:$0xff]  }
 0x164   :  { %v3633_v25 = vpack.c.bf16 %v578_v19, %v578_v19  ;;  %v581_v53 = vmax.f32 %v574_v48, 0.0  ;;  %v3221_v18 = vld [vmem:[#allocation7 + $0x518] ss:$24 sps:$4 sm:$0xff]   ;;  %v3226_v19 = vld [vmem:[#allocation7 + $0x544] ss:$24 sps:$4 sm:$0xff]   ;;  %v3346_v47 = vld [vmem:[#allocation8 + $0x48] sm:$0xff]  }
 0x165   :  { %v3631_v22 = vpack.c.bf16 %v579_v21, %v579_v21  ;;  %v159_v21 = vsub.s32 2, %v3616_v8  ;;  %v3250_v41 = vld [vmem:[#allocation7 + $0x14] ss:$24 sps:$4 sm:$0xff]   ;;  %v3251_v48 = vld [vmem:[#allocation7 + $0x40] ss:$24 sps:$4 sm:$0xff]  }
 0x166   :  { %v3645_v56 = vpack.c.bf16 %v581_v53, %v581_v53  ;;  %v3256_v49 = vld [vmem:[#allocation7 + $0x74] ss:$24 sps:$4 sm:$0xff]   ;;  %v3259_v53 = vld [vmem:[#allocation7 + $0xa4] ss:$24 sps:$4 sm:$0xff]  }
 0x167   :  { %1802 = vmatprep.mubr.bf16.mxu0 %v3631_v22  ;;  %1884 = vmatprep.mubr.bf16.mxu1 %v3631_v22  ;;  %v3347_v50 = vld [vmem:[#allocation8 + $0x8] sm:$0xff]  }
 0x168   :  { %1803 = vmatmul.mubr.bf16.vlgmr.msra.gmra.mrb[4].mxu0 %v3633_v25  ;;  %1885 = vmatmul.mubr.bf16.vlgmr.msra.gmra.mrb[4].mxu1 %v3633_v25 }
 0x169   :  { %1812 = vmatpush1.bf16.msra.mxu0 %v3152_v23  ;;  %1894 = vmatpush1.bf16.msra.mxu1 %v3155_v24  ;;  %v3224_v23 = vld [vmem:[#allocation7 + $0x540] ss:$24 sps:$4 sm:$0xff]  }
 0x16a   :  { %1813 = vmatprep.subr.bf16.mxu0 %v3160_v26  ;;  %1895 = vmatprep.subr.bf16.mxu1 %v3163_v27  ;;  %v3227_v24 = vld [vmem:[#allocation7 + $0x548] ss:$24 sps:$4 sm:$0xff]   ;;  %v3232_v26 = vld [vmem:[#allocation7 + $0x574] ss:$24 sps:$4 sm:$0xff]  }
 0x16b   :  { %1843 = vmatprep.mubr.bf16.mxu0 %v3645_v56  ;;  %1925 = vmatprep.mubr.bf16.mxu1 %v3645_v56  ;;  %v3235_v27 = vld [vmem:[#allocation7 + $0x57c] ss:$24 sps:$4 sm:$0xff]  }
 0x16d   :  { %1814 = vmatpush1.bf16.msra.mxu0 %v3158_v28  ;;  %1896 = vmatpush1.bf16.msra.mxu1 %v3161_v29  ;;  %v160_v28 = vrot.slane %v3622_v10, %v159_v21  ;;  %v3230_v29 = vld [vmem:[#allocation7 + $0x570] ss:$24 sps:$4 sm:$0xff]  }
 0x16e   :  { %1815 = vmatprep.subr.bf16.mxu0 %v3166_v30  ;;  %1897 = vmatprep.subr.bf16.mxu1 %v3169_v31  ;;  %v3233_v30 = vld [vmem:[#allocation7 + $0x578] ss:$24 sps:$4 sm:$0xff]   ;;  %v3238_v31 = vld [vmem:[#allocation7 + $0x5a4] ss:$24 sps:$4 sm:$0xff]  }
 0x16f   :  { %v3242_v10 = vld [vmem:[#allocation7 + $0x5d0] ss:$24 sps:$4 sm:$0xff]  }
 0x171   :  { %1816 = vmatpush1.bf16.msra.mxu0 %v3164_v32  ;;  %1898 = vmatpush1.bf16.msra.mxu1 %v3167_v33  ;;  %v3241_v32 = vld [vmem:[#allocation7 + $0x5ac] ss:$24 sps:$4 sm:$0xff]   ;;  %v572_v33 = vadd.f32 %v3643_v44, %v160_v28  ;;  %v3293_v28 = vld [vmem:[#allocation7 + $0x2e0] ss:$24 sps:$4 sm:$0xff]  }
 0x172   :  { %1817 = vmatprep.subr.bf16.mxu0 %v3172_v34  ;;  %1899 = vmatprep.subr.bf16.mxu1 %v3175_v35  ;;  %v3236_v34 = vld [vmem:[#allocation7 + $0x5a0] ss:$24 sps:$4 sm:$0xff]   ;;  %v3253_v44 = vld [vmem:[#allocation7 + $0x44] ss:$24 sps:$4 sm:$0xff]  }
 0x173   :  { %v3239_v35 = vld [vmem:[#allocation7 + $0x5a8] ss:$24 sps:$4 sm:$0xff]  }
 0x175   :  { %1818 = vmatpush1.bf16.msra.mxu0 %v3170_v37  ;;  %1900 = vmatpush1.bf16.msra.mxu1 %v3173_v38  ;;  %v3244_v37 = vld [vmem:[#allocation7 + $0x5d4] ss:$24 sps:$4 sm:$0xff]  }
 0x176   :  { %1819 = vmatprep.subr.bf16.mxu0 %v3178_v39  ;;  %1901 = vmatprep.subr.bf16.mxu1 %v3181_v40  ;;  %v3247_v38 = vld [vmem:[#allocation7 + $0x5dc] ss:$24 sps:$4 sm:$0xff]   ;;  %v580_v39 = vmax.f32 %v572_v33, 0.0  ;;  %v3245_v40 = vld [vmem:[#allocation7 + $0x5d8] ss:$24 sps:$4 sm:$0xff]  }
 0x177   :  { %v3304_v33 = vld [vmem:[#allocation7 + $0x374] ss:$24 sps:$4 sm:$0xff]  }
 0x179   :  { %1820 = vmatpush1.bf16.msra.mxu0 %v3176_v42  ;;  %1902 = vmatpush1.bf16.msra.mxu1 %v3179_v43  ;;  %v3654_v42 = vpack.c.bf16 %v580_v39, %v580_v39  ;;  %v3248_v43 = vld [vmem:[#allocation7 + $0x10] ss:$24 sps:$4 sm:$0xff]  }
 0x17a   :  { %1821 = vmatprep.subr.bf16.mxu0 %v3184_v45  ;;  %1903 = vmatprep.subr.bf16.mxu1 %v3187_v46  ;;  %v3344_v45 = vld [vmem:[#allocation8 + $0x40] sm:$0xff]   ;;  %v3308_v39 = vld [vmem:[#allocation7 + $0x3d0] ss:$24 sps:$4 sm:$0xff]  }
 0x17b   :  { %v3345_v46 = vld [vmem:[#allocation8] sm:$0xff]  }
 0x17d   :  { %1822 = vmatpush1.bf16.msra.mxu0 %v3182_v51  ;;  %1904 = vmatpush1.bf16.msra.mxu1 %v3185_v52  ;;  %v3348_v51 = vld [vmem:[#allocation8 + $0x50] sm:$0xff]  }
 0x17e   :  { %1823 = vmatprep.subr.bf16.mxu0 %v3190_v54  ;;  %1905 = vmatprep.subr.bf16.mxu1 %v3193_v55  ;;  %v3254_v52 = vld [vmem:[#allocation7 + $0x70] ss:$24 sps:$4 sm:$0xff]   ;;  %v3350_v55 = vld [vmem:[#allocation8 + $0x58] sm:$0xff]  }
 0x17f   :  { %v3349_v54 = vld [vmem:[#allocation8 + $0x10] sm:$0xff]  }
 0x181   :  { %1824 = vmatpush1.bf16.msra.mxu0 %v3188_v57  ;;  %1906 = vmatpush1.bf16.msra.mxu1 %v3191_v58  ;;  %v3257_v57 = vld [vmem:[#allocation7 + $0xa0] ss:$24 sps:$4 sm:$0xff]  }
 0x182   :  { %1825 = vmatprep.subr.bf16.mxu0 %v3196_v59  ;;  %1907 = vmatprep.subr.bf16.mxu1 %v3199_v60  ;;  %v3351_v58 = vld [vmem:[#allocation8 + $0x18] sm:$0xff]   ;;  %v3352_v59 = vld [vmem:[#allocation8 + $0x60] sm:$0xff]   ;;  %v3260_v60 = vld [vmem:[#allocation7 + $0xd0] ss:$24 sps:$4 sm:$0xff]  }
 0x185   :  { %1826 = vmatpush1.bf16.msra.mxu0 %v3194_v61  ;;  %1908 = vmatpush1.bf16.msra.mxu1 %v3197_v62  ;;  %v3265_v61 = vld [vmem:[#allocation7 + $0x104] ss:$24 sps:$4 sm:$0xff]  }
 0x186   :  { %1827 = vmatprep.subr.bf16.mxu0 %v3202_v63  ;;  %1909 = vmatprep.subr.bf16.mxu1 %v3205_v0  ;;  %v3353_v62 = vld [vmem:[#allocation8 + $0x20] sm:$0xff]   ;;  %v3354_v63 = vld [vmem:[#allocation8 + $0x68] sm:$0xff]  }
 0x187   :  { %v3263_v0 = vld [vmem:[#allocation7 + $0x100] ss:$24 sps:$4 sm:$0xff]  }
 0x189   :  { %1828 = vmatpush1.bf16.msra.mxu0 %v3200_v1  ;;  %1910 = vmatpush1.bf16.msra.mxu1 %v3203_v2  ;;  %v3268_v1 = vld [vmem:[#allocation7 + $0x134] ss:$24 sps:$4 sm:$0xff]  }
 0x18a   :  { %1829 = vmatprep.subr.bf16.mxu0 %v3208_v3  ;;  %1911 = vmatprep.subr.bf16.mxu1 %v3211_v4  ;;  %v3355_v2 = vld [vmem:[#allocation8 + $0x28] sm:$0xff]   ;;  %v3271_v4 = vld [vmem:[#allocation7 + $0x164] ss:$24 sps:$4 sm:$0xff]  }
 0x18b   :  { %v3266_v3 = vld [vmem:[#allocation7 + $0x130] ss:$24 sps:$4 sm:$0xff]  }
 0x18d   :  { %1830 = vmatpush1.bf16.msra.mxu0 %v3206_v5  ;;  %1912 = vmatpush1.bf16.msra.mxu1 %v3209_v6  ;;  %v3269_v5 = vld [vmem:[#allocation7 + $0x160] ss:$24 sps:$4 sm:$0xff]   ;;  %v3274_v6 = vld [vmem:[#allocation7 + $0x194] ss:$24 sps:$4 sm:$0xff]  }
 0x18e   :  { %1831 = vmatprep.subr.bf16.mxu0 %v3214_v7  ;;  %1913 = vmatprep.subr.bf16.mxu1 %v3217_v12  ;;  %v3272_v7 = vld [vmem:[#allocation7 + $0x190] ss:$24 sps:$4 sm:$0xff]   ;;  %v3277_v12 = vld [vmem:[#allocation7 + $0x1c4] ss:$24 sps:$4 sm:$0xff]  }
 0x191   :  { %1832 = vmatpush1.bf16.msra.mxu0 %v3212_v13  ;;  %1914 = vmatpush1.bf16.msra.mxu1 %v3215_v14  ;;  %v3275_v13 = vld [vmem:[#allocation7 + $0x1c0] ss:$24 sps:$4 sm:$0xff]   ;;  %v3280_v14 = vld [vmem:[#allocation7 + $0x1f4] ss:$24 sps:$4 sm:$0xff]  }
 0x192   :  { %1833 = vmatprep.subr.bf16.mxu0 %v3220_v15  ;;  %1915 = vmatprep.subr.bf16.mxu1 %v3223_v16  ;;  %v3278_v15 = vld [vmem:[#allocation7 + $0x1f0] ss:$24 sps:$4 sm:$0xff]   ;;  %v3283_v16 = vld [vmem:[#allocation7 + $0x224] ss:$24 sps:$4 sm:$0xff]  }
 0x195   :  { %1834 = vmatpush1.bf16.msra.mxu0 %v3218_v17  ;;  %1916 = vmatpush1.bf16.msra.mxu1 %v3221_v18  ;;  %v3281_v17 = vld [vmem:[#allocation7 + $0x220] ss:$24 sps:$4 sm:$0xff]   ;;  %v3286_v18 = vld [vmem:[#allocation7 + $0x254] ss:$24 sps:$4 sm:$0xff]  }
 0x196   :  { %1835 = vmatprep.subr.bf16.mxu0 %v3226_v19  ;;  %1917 = vmatprep.subr.bf16.mxu1 %v3229_v20  ;;  %v3284_v19 = vld [vmem:[#allocation7 + $0x250] ss:$24 sps:$4 sm:$0xff]   ;;  %v3289_v20 = vld [vmem:[#allocation7 + $0x284] ss:$24 sps:$4 sm:$0xff]  }
 0x199   :  { %1836 = vmatpush1.bf16.msra.mxu0 %v3224_v23  ;;  %1918 = vmatpush1.bf16.msra.mxu1 %v3227_v24  ;;  %v3287_v23 = vld [vmem:[#allocation7 + $0x280] ss:$24 sps:$4 sm:$0xff]   ;;  %v3292_v24 = vld [vmem:[#allocation7 + $0x2b4] ss:$24 sps:$4 sm:$0xff]  }
 0x19a   :  { %1837 = vmatprep.subr.bf16.mxu0 %v3232_v26  ;;  %1919 = vmatprep.subr.bf16.mxu1 %v3235_v27  ;;  %v3290_v26 = vld [vmem:[#allocation7 + $0x2b0] ss:$24 sps:$4 sm:$0xff]   ;;  %v3295_v27 = vld [vmem:[#allocation7 + $0x2e4] ss:$24 sps:$4 sm:$0xff]  }
 0x19d   :  { %1838 = vmatpush1.bf16.msra.mxu0 %v3230_v29  ;;  %1920 = vmatpush1.bf16.msra.mxu1 %v3233_v30  ;;  %v3298_v29 = vld [vmem:[#allocation7 + $0x314] ss:$24 sps:$4 sm:$0xff]   ;;  %v3296_v30 = vld [vmem:[#allocation7 + $0x310] ss:$24 sps:$4 sm:$0xff]  }
 0x19e   :  { %1839 = vmatprep.subr.bf16.mxu0 %v3238_v31  ;;  %1921 = vmatprep.subr.bf16.mxu1 %v3241_v32  ;;  %v3301_v31 = vld [vmem:[#allocation7 + $0x344] ss:$24 sps:$4 sm:$0xff]   ;;  %v3299_v32 = vld [vmem:[#allocation7 + $0x340] ss:$24 sps:$4 sm:$0xff]  }
 0x1a1   :  { %1840 = vmatpush1.bf16.msra.mxu0 %v3236_v34  ;;  %1922 = vmatpush1.bf16.msra.mxu1 %v3239_v35  ;;  %v3302_v34 = vld [vmem:[#allocation7 + $0x370] ss:$24 sps:$4 sm:$0xff]   ;;  %v3307_v35 = vld [vmem:[#allocation7 + $0x3a4] ss:$24 sps:$4 sm:$0xff]  }
 0x1a2   :  { %1841 = vmatprep.subr.bf16.mxu0 %v3244_v37  ;;  %1923 = vmatprep.subr.bf16.mxu1 %v3247_v38  ;;  %v3305_v37 = vld [vmem:[#allocation7 + $0x3a0] ss:$24 sps:$4 sm:$0xff]   ;;  %v3310_v38 = vld [vmem:[#allocation7 + $0x3d4] ss:$24 sps:$4 sm:$0xff]  }
 0x1a5   :  { %1842 = vmatpush1.bf16.msra.mxu0 %v3242_v10  ;;  %1924 = vmatpush1.bf16.msra.mxu1 %v3245_v40  ;;  %v3313_v10 = vld [vmem:[#allocation7 + $0x404] ss:$24 sps:$4 sm:$0xff]   ;;  %v3356_v40 = vld [vmem:[#allocation8 + $0x70] sm:$0xff]  }
 0x1a6   :  { %1934 = vmatprep.subr.bf16.mxu0 %v3250_v41  ;;  %2864 = vmatprep.subr.bf16.mxu1 %v3344_v45  ;;  %v3357_v41 = vld [vmem:[#allocation8 + $0x30] sm:$0xff]   ;;  %v3319_v45 = vld [vmem:[#allocation7 + $0x464] ss:$24 sps:$4 sm:$0xff]  }
 0x1a8   :  { %1844 = vmatmul.mubr.bf16.vlgmr.msra.gmra.mrb[4].mxu0 %v3654_v42  ;;  %1926 = vmatmul.mubr.bf16.vlgmr.msra.gmra.mrb[4].mxu1 %v3654_v42 }
 0x1a9   :  { %1935 = vmatpush1.bf16.msra.mxu0 %v3248_v43  ;;  %1966 = vmatprep.mubr.bf16.mxu0 %v3631_v22  ;;  %v3262_v22 = vld [vmem:[#allocation7 + $0xd4] ss:$24 sps:$4 sm:$0xff]   ;;  %v3314_v43 = vld [vmem:[#allocation7 + $0x430] ss:$24 sps:$4 sm:$0xff]  }
 0x1aa   :  { %1936 = vmatprep.subr.bf16.mxu0 %v3253_v44  ;;  %2865 = vmatpush3.bf16.msra.mxu1 %v3345_v46  ;;  %v3358_v44 = vld [vmem:[#allocation8 + $0x78] sm:$0xff]  }
 0x1ab   :  { %2866 = vmatprep.subr.bf16.mxu1 %v3346_v47  ;;  %v3359_v46 = vld [vmem:[#allocation8 + $0x38] sm:$0xff]  }
 0x1ac   :  { %v3317_v47 = vld [vmem:[#allocation7 + $0x460] ss:$24 sps:$4 sm:$0xff]  }
 0x1ad   :  { %1937 = vmatpush1.bf16.msra.mxu0 %v3251_v48  ;;  %v3360_v48 = vld [vmem:[#allocation8 + $0xc0] sm:$0xff]  }
 0x1ae   :  { %1938 = vmatprep.subr.bf16.mxu0 %v3256_v49  ;;  %2867 = vmatpush3.bf16.msra.mxu1 %v3347_v50  ;;  %v3322_v49 = vld [vmem:[#allocation7 + $0x494] ss:$24 sps:$4 sm:$0xff]   ;;  %v3320_v50 = vld [vmem:[#allocation7 + $0x490] ss:$24 sps:$4 sm:$0xff]  }
 0x1af   :  { %2868 = vmatprep.subr.bf16.mxu1 %v3348_v51  ;;  %v3325_v51 = vld [vmem:[#allocation7 + $0x4c4] ss:$24 sps:$4 sm:$0xff]  }
 0x1b1   :  { %1939 = vmatpush1.bf16.msra.mxu0 %v3254_v52  ;;  %v3323_v52 = vld [vmem:[#allocation7 + $0x4c0] ss:$24 sps:$4 sm:$0xff]  }
 0x1b2   :  { %1940 = vmatprep.subr.bf16.mxu0 %v3259_v53  ;;  %2869 = vmatpush3.bf16.msra.mxu1 %v3349_v54  ;;  %v3328_v53 = vld [vmem:[#allocation7 + $0x4f4] ss:$24 sps:$4 sm:$0xff]   ;;  %v3326_v54 = vld [vmem:[#allocation7 + $0x4f0] ss:$24 sps:$4 sm:$0xff]  }
 0x1b3   :  { %2870 = vmatprep.subr.bf16.mxu1 %v3350_v55  ;;  %v3331_v55 = vld [vmem:[#allocation7 + $0x524] ss:$24 sps:$4 sm:$0xff]  }
 0x1b5   :  { %1941 = vmatpush1.bf16.msra.mxu0 %v3257_v57  ;;  %v3329_v57 = vld [vmem:[#allocation7 + $0x520] ss:$24 sps:$4 sm:$0xff]  }
 0x1b6   :  { %1942 = vmatprep.subr.bf16.mxu0 %v3262_v22  ;;  %2871 = vmatpush3.bf16.msra.mxu1 %v3351_v58  ;;  %v3334_v22 = vld [vmem:[#allocation7 + $0x554] ss:$24 sps:$4 sm:$0xff]   ;;  %v3332_v58 = vld [vmem:[#allocation7 + $0x550] ss:$24 sps:$4 sm:$0xff]  }
 0x1b7   :  { %2872 = vmatprep.subr.bf16.mxu1 %v3352_v59  ;;  %v3337_v59 = vld [vmem:[#allocation7 + $0x584] ss:$24 sps:$4 sm:$0xff]  }
 0x1b9   :  { %1943 = vmatpush1.bf16.msra.mxu0 %v3260_v60  ;;  %v3335_v60 = vld [vmem:[#allocation7 + $0x580] ss:$24 sps:$4 sm:$0xff]  }
 0x1ba   :  { %1944 = vmatprep.subr.bf16.mxu0 %v3265_v61  ;;  %2873 = vmatpush3.bf16.msra.mxu1 %v3353_v62  ;;  %v3340_v61 = vld [vmem:[#allocation7 + $0x5b4] ss:$24 sps:$4 sm:$0xff]   ;;  %v3338_v62 = vld [vmem:[#allocation7 + $0x5b0] ss:$24 sps:$4 sm:$0xff]  }
 0x1bb   :  { %2874 = vmatprep.subr.bf16.mxu1 %v3354_v63  ;;  %v3343_v63 = vld [vmem:[#allocation7 + $0x5e4] ss:$24 sps:$4 sm:$0xff]  }
 0x1bd   :  { %1945 = vmatpush1.bf16.msra.mxu0 %v3263_v0  ;;  %v3341_v0 = vld [vmem:[#allocation7 + $0x5e0] ss:$24 sps:$4 sm:$0xff]  }
 0x1be   :  { %1946 = vmatprep.subr.bf16.mxu0 %v3268_v1  ;;  %2875 = vmatpush3.bf16.msra.mxu1 %v3355_v2  ;;  %v3665_v1 = vld [vmem:[%s3702_s4] sm:$0x3f] }
 0x1bf   :  { %2876 = vmatprep.subr.bf16.mxu1 %v3356_v40  ;;  %v783_v2 = vrot.slane %v3665_v1, %v151_v9  ;;  %v3375_v40 = vld [vmem:[#allocation8 + $0xb8] sm:$0xff]  }
 0x1c1   :  { %1947 = vmatpush1.bf16.msra.mxu0 %v3266_v3  ;;  %v787_v3 = vrot.slane %v3665_v1, %v155_v11  ;;  %v3361_v11 = vld [vmem:[#allocation8 + $0x80] sm:$0xff]  }
 0x1c2   :  { %1948 = vmatprep.subr.bf16.mxu0 %v3271_v4  ;;  %2877 = vmatpush3.bf16.msra.mxu1 %v3357_v41  ;;  %v795_v4 = vrot.slane %v3665_v1, %v163_v36  ;;  %v3363_v36 = vld [vmem:[#allocation8 + $0x88] sm:$0xff]   ;;  %v3376_v41 = vld [vmem:[#allocation8 + $0x140] sm:$0xff]  }
 0x1c3   :  { %2878 = vmatprep.subr.bf16.mxu1 %v3358_v44 }
 0x1c5   :  { %1949 = vmatpush1.bf16.msra.mxu0 %v3269_v5 }
 0x1c6   :  { %1950 = vmatprep.subr.bf16.mxu0 %v3274_v6  ;;  %2879 = vmatpush3.bf16.msra.mxu1 %v3359_v46  ;;  %v3380_v46 = vld [vmem:[#allocation8 + $0x150] sm:$0xff]  }
 0x1c7   :  { %2886 = vmatprep.subr.bf16.mxu1 %v3360_v48  ;;  %v3382_v48 = vld [vmem:[#allocation8 + $0x158] sm:$0xff]  }
 0x1c9   :  { %1951 = vmatpush1.bf16.msra.mxu0 %v3272_v7 }
 0x1ca   :  { %1952 = vmatprep.subr.bf16.mxu0 %v3277_v12 }
 0x1cd   :  { %1953 = vmatpush1.bf16.msra.mxu0 %v3275_v13 }
 0x1ce   :  { %1954 = vmatprep.subr.bf16.mxu0 %v3280_v14 }
 0x1d1   :  { %1955 = vmatpush1.bf16.msra.mxu0 %v3278_v15 }
 0x1d2   :  { %1956 = vmatprep.subr.bf16.mxu0 %v3283_v16 }
 0x1d5   :  { %1957 = vmatpush1.bf16.msra.mxu0 %v3281_v17 }
 0x1d6   :  { %1958 = vmatprep.subr.bf16.mxu0 %v3286_v18 }
 0x1d9   :  { %1959 = vmatpush1.bf16.msra.mxu0 %v3284_v19 }
 0x1da   :  { %1960 = vmatprep.subr.bf16.mxu0 %v3289_v20 }
 0x1dd   :  { %1961 = vmatpush1.bf16.msra.mxu0 %v3287_v23 }
 0x1de   :  { %1962 = vmatprep.subr.bf16.mxu0 %v3292_v24 }
 0x1e1   :  { %1963 = vmatpush1.bf16.msra.mxu0 %v3290_v26  ;;  %v3362_v26 = vld [vmem:[#allocation8 + $0xc8] sm:$0xff]  }
 0x1e2   :  { %1964 = vmatprep.subr.bf16.mxu0 %v3295_v27 }
 0x1e5   :  { %1965 = vmatpush1.bf16.msra.mxu0 %v3293_v28  ;;  %v3364_v28 = vld [vmem:[#allocation8 + $0xd0] sm:$0xff]  }
 0x1e6   :  { %1975 = vmatprep.subr.bf16.mxu0 %v3298_v29  ;;  %v3365_v29 = vld [vmem:[#allocation8 + $0x90] sm:$0xff]  }
 0x1e8   :  { %1967 = vmatmul.mubr.bf16.vlgmr.msra.gmra.mrb[8].mxu0 %v3633_v25  ;;  %v3311_v25 = vld [vmem:[#allocation7 + $0x400] ss:$24 sps:$4 sm:$0xff]  }
 0x1e9   :  { %1976 = vmatpush1.bf16.msra.mxu0 %v3296_v30  ;;  %2007 = vmatprep.mubr.bf16.mxu0 %v3645_v56  ;;  %v3316_v56 = vld [vmem:[#allocation7 + $0x434] ss:$24 sps:$4 sm:$0xff]   ;;  %v3366_v30 = vld [vmem:[#allocation8 + $0xd8] sm:$0xff]  }
 0x1ea   :  { %1977 = vmatprep.subr.bf16.mxu0 %v3301_v31  ;;  %v3367_v31 = vld [vmem:[#allocation8 + $0x98] sm:$0xff]  }
 0x1ed   :  { %1978 = vmatpush1.bf16.msra.mxu0 %v3299_v32  ;;  %v3368_v32 = vld [vmem:[#allocation8 + $0xe0] sm:$0xff]  }
 0x1ee   :  { %1979 = vmatprep.subr.bf16.mxu0 %v3304_v33  ;;  %v3369_v33 = vld [vmem:[#allocation8 + $0xa0] sm:$0xff]  }
 0x1f1   :  { %1980 = vmatpush1.bf16.msra.mxu0 %v3302_v34  ;;  %v3370_v34 = vld [vmem:[#allocation8 + $0xe8] sm:$0xff]  }
 0x1f2   :  { %1981 = vmatprep.subr.bf16.mxu0 %v3307_v35  ;;  %v3371_v35 = vld [vmem:[#allocation8 + $0xa8] sm:$0xff]  }
 0x1f5   :  { %1982 = vmatpush1.bf16.msra.mxu0 %v3305_v37  ;;  %v791_v37 = vrot.slane %v3665_v1, %v159_v21  ;;  %v3379_v21 = vld [vmem:[#allocation8 + $0x108] sm:$0xff]  }
 0x1f6   :  { %1983 = vmatprep.subr.bf16.mxu0 %v3310_v38  ;;  %v3372_v38 = vld [vmem:[#allocation8 + $0xf0] sm:$0xff]  }
 0x1f9   :  { %1984 = vmatpush1.bf16.msra.mxu0 %v3308_v39  ;;  %v3373_v39 = vld [vmem:[#allocation8 + $0xb0] sm:$0xff]  }
 0x1fa   :  { %1985 = vmatprep.subr.bf16.mxu0 %v3313_v10 }
 0x1fd   :  { %1986 = vmatpush1.bf16.msra.mxu0 %v3311_v25  ;;  %v3374_v25 = vld [vmem:[#allocation8 + $0xf8] sm:$0xff]  }
 0x1fe   :  { %1987 = vmatprep.subr.bf16.mxu0 %v3316_v56 }
 0x201   :  { %1988 = vmatpush1.bf16.msra.mxu0 %v3314_v43  ;;  %v3377_v43 = vld [vmem:[#allocation8 + $0x100] sm:$0xff]  }
 0x202   :  { %1989 = vmatprep.subr.bf16.mxu0 %v3319_v45  ;;  %v3378_v45 = vld [vmem:[#allocation8 + $0x148] sm:$0xff]  }
 0x205   :  { %1990 = vmatpush1.bf16.msra.mxu0 %v3317_v47  ;;  %v3381_v47 = vld [vmem:[#allocation8 + $0x110] sm:$0xff]  }
 0x206   :  { %1991 = vmatprep.subr.bf16.mxu0 %v3322_v49  ;;  %v3383_v49 = vld [vmem:[#allocation8 + $0x118] sm:$0xff]  }
 0x209   :  { %1992 = vmatpush1.bf16.msra.mxu0 %v3320_v50  ;;  %v3384_v50 = vld [vmem:[#allocation8 + $0x160] sm:$0xff]  }
 0x20a   :  { %1993 = vmatprep.subr.bf16.mxu0 %v3325_v51  ;;  %v3385_v51 = vld [vmem:[#allocation8 + $0x120] sm:$0xff]  }
 0x20d   :  { %1994 = vmatpush1.bf16.msra.mxu0 %v3323_v52  ;;  %v3386_v52 = vld [vmem:[#allocation8 + $0x168] sm:$0xff]  }
 0x20e   :  { %1995 = vmatprep.subr.bf16.mxu0 %v3328_v53  ;;  %v3387_v53 = vld [vmem:[#allocation8 + $0x128] sm:$0xff]  }
 0x211   :  { %1996 = vmatpush1.bf16.msra.mxu0 %v3326_v54  ;;  %v3388_v54 = vld [vmem:[#allocation8 + $0x170] sm:$0xff]  }
 0x212   :  { %1997 = vmatprep.subr.bf16.mxu0 %v3331_v55  ;;  %v3389_v55 = vld [vmem:[#allocation8 + $0x130] sm:$0xff]  }
 0x215   :  { %1998 = vmatpush1.bf16.msra.mxu0 %v3329_v57  ;;  %v3390_v57 = vld [vmem:[#allocation8 + $0x178] sm:$0xff]  }
 0x216   :  { %1999 = vmatprep.subr.bf16.mxu0 %v3334_v22  ;;  %v3391_v22 = vld [vmem:[#allocation8 + $0x138] sm:$0xff]  }
 0x219   :  { %2000 = vmatpush1.bf16.msra.mxu0 %v3332_v58  ;;  %v798_v58 = vsub.s32 4, %v3616_v8 }
 0x21a   :  { %2001 = vmatprep.subr.bf16.mxu0 %v3337_v59  ;;  %v802_v59 = vsub.s32 5, %v3616_v8 }
 0x21d   :  { %2002 = vmatpush1.bf16.msra.mxu0 %v3335_v60  ;;  %v799_v60 = vrot.slane %v3665_v1, %v798_v58 }
 0x21e   :  { %2003 = vmatprep.subr.bf16.mxu0 %v3340_v61  ;;  %v803_v61 = vrot.slane %v3665_v1, %v802_v59  ;;  %v2815_v1 = vld [vmem:[%s3704_s6] ss:$0 sm:$0xff] }
 0x221   :  { %2004 = vmatpush1.bf16.msra.mxu0 %v3338_v62 }
 0x222   :  { %2005 = vmatprep.subr.bf16.mxu0 %v3343_v63 }
 0x225   :  { %2006 = vmatpush1.bf16.msra.mxu0 %v3341_v0 }
 0x228   :  { %2008 = vmatmul.mubr.bf16.vlgmr.msra.gmra.mrb[8].mxu0 %v3654_v42 }
 0x27b   :  { %v1845_v5 = vpop.f32.mrb[4].mxu0  ;;  %v1927_v6 = vpop.f32.mrb[4].mxu1 }
 0x27c   :  { %v2930_v42 = vadd.f32 %v1845_v5, %v783_v2  ;;  %v1847_v7 = vpop.f32.mrb[5].mxu0  ;;  %v1929_v12 = vpop.f32.mrb[5].mxu1  ;;  %v2932_v10 = vadd.f32 %v1927_v6, %v791_v37 }
 0x27d   :  { %v2931_v13 = vadd.f32 %v1847_v7, %v787_v3  ;;  %v2933_v14 = vadd.f32 %v1929_v12, %v795_v4  ;;  %v1849_v15 = vpop.f32.mrb[6].mxu0  ;;  %v1931_v16 = vpop.f32.mrb[6].mxu1 }
 0x27e   :  { %v2016_v17 = vmax.f32 %v2930_v42, 0.0  ;;  %v1850_v18 = vpop.f32.mrb[7].mxu0  ;;  %v1932_v9 = vpop.f32.mrb[7].mxu1  ;;  %v2018_v56 = vmax.f32 %v2932_v10, 0.0 }
 0x27f   :  { %v2017_v19 = vmax.f32 %v2931_v13, 0.0  ;;  %v2019_v20 = vmax.f32 %v2933_v14, 0.0 }
 0x280   :  { %v2022_v24 = vpack.c.bf16 %v2016_v17, %v2016_v17  ;;  %v2024_v44 = vpack.c.bf16 %v2018_v56, %v2018_v56 }
 0x281   :  { %v2023_v23 = vpack.c.bf16 %v2017_v19, %v2017_v19  ;;  %v2025_v27 = vpack.c.bf16 %v2019_v20, %v2019_v20 }
 0x283   :  { %2451 = vmatprep.mubr.bf16.mxu1 %v2023_v23 }
 0x284   :  { %2452 = vmatmul.mubr.bf16.vlgmr.msra.gmra.mrb[8].mxu1 %v2022_v24 }
 0x285   :  { %2887 = vmatpush3.bf16.msra.mxu1 %v3361_v11  ;;  %2491 = vmatprep.mubr.bf16.mxu1 %v2025_v27 }
 0x286   :  { %2888 = vmatprep.subr.bf16.mxu1 %v3362_v26 }
 0x289   :  { %2889 = vmatpush3.bf16.msra.mxu1 %v3363_v36 }
 0x28a   :  { %2890 = vmatprep.subr.bf16.mxu1 %v3364_v28 }
 0x28d   :  { %2891 = vmatpush3.bf16.msra.mxu1 %v3365_v29 }
 0x28e   :  { %2892 = vmatprep.subr.bf16.mxu1 %v3366_v30 }
 0x291   :  { %2893 = vmatpush3.bf16.msra.mxu1 %v3367_v31 }
 0x292   :  { %2894 = vmatprep.subr.bf16.mxu1 %v3368_v32 }
 0x295   :  { %2895 = vmatpush3.bf16.msra.mxu1 %v3369_v33 }
 0x296   :  { %2896 = vmatprep.subr.bf16.mxu1 %v3370_v34 }
 0x299   :  { %2897 = vmatpush3.bf16.msra.mxu1 %v3371_v35 }
 0x29a   :  { %2898 = vmatprep.subr.bf16.mxu1 %v3372_v38 }
 0x29d   :  { %2899 = vmatpush3.bf16.msra.mxu1 %v3373_v39 }
 0x29e   :  { %2900 = vmatprep.subr.bf16.mxu1 %v3374_v25 }
 0x2a1   :  { %2901 = vmatpush3.bf16.msra.mxu1 %v3375_v40 }
 0x2a2   :  { %2908 = vmatprep.subr.bf16.mxu1 %v3376_v41 }
 0x2a4   :  { %2492 = vmatmul.mubr.bf16.vlgmr.msra.gmra.mrb[12].mxu1 %v2024_v44 }
 0x2a5   :  { %2909 = vmatpush3.bf16.msra.mxu1 %v3377_v43 }
 0x2a6   :  { %2910 = vmatprep.subr.bf16.mxu1 %v3378_v45 }
 0x2a9   :  { %2911 = vmatpush3.bf16.msra.mxu1 %v3379_v21 }
 0x2aa   :  { %2912 = vmatprep.subr.bf16.mxu1 %v3380_v46 }
 0x2ad   :  { %2913 = vmatpush3.bf16.msra.mxu1 %v3381_v47 }
 0x2ae   :  { %2914 = vmatprep.subr.bf16.mxu1 %v3382_v48 }
 0x2b1   :  { %2915 = vmatpush3.bf16.msra.mxu1 %v3383_v49 }
 0x2b2   :  { %2916 = vmatprep.subr.bf16.mxu1 %v3384_v50 }
 0x2b5   :  { %2917 = vmatpush3.bf16.msra.mxu1 %v3385_v51 }
 0x2b6   :  { %2918 = vmatprep.subr.bf16.mxu1 %v3386_v52 }
 0x2b9   :  { %2919 = vmatpush3.bf16.msra.mxu1 %v3387_v53 }
 0x2ba   :  { %2920 = vmatprep.subr.bf16.mxu1 %v3388_v54 }
 0x2bd   :  { %2921 = vmatpush3.bf16.msra.mxu1 %v3389_v55 }
 0x2be   :  { %2922 = vmatprep.subr.bf16.mxu1 %v3390_v57 }
 0x2c1   :  { %2923 = vmatpush3.bf16.msra.mxu1 %v3391_v22 }
 0x2fb   :  { %v2009_v62 = vpop.f32.mrb[8].mxu0 }
 0x2fc   :  { %v2934_v63 = vadd.f32 %v2009_v62, %v799_v60  ;;  %v2011_v0 = vpop.f32.mrb[9].mxu0 }
 0x2fd   :  { %v2935_v2 = vadd.f32 %v2011_v0, %v803_v61  ;;  %v2013_v3 = vpop.f32.mrb[10].mxu0 }
 0x2fe   :  { %v2020_v4 = vmax.f32 %v2934_v63, 0.0  ;;  %v2014_v5 = vpop.f32.mrb[11].mxu0 }
 0x2ff   :  { %v2021_v6 = vmax.f32 %v2935_v2, 0.0 }
 0x300   :  { %v2026_v7 = vpack.c.bf16 %v2020_v4, %v2020_v4 }
 0x301   :  { %v2027_v42 = vpack.c.bf16 %v2021_v6, %v2021_v6 }
 0x303   :  { %2531 = vmatprep.mubr.bf16.mxu1 %v2027_v42 }
 0x304   :  { %2532 = vmatmul.mubr.bf16.vlgmr.msra.gmra.mrb[16].mxu1 %v2026_v7 }
 0x357   :  { %v2880_v12 = vpop.f32.mrb[8].mxu1 }
 0x358   :  { %v2881_v13 = vpop.f32.mrb[9].mxu1 }
 0x359   :  { %v2882_v14 = vadd.f32 %v2881_v13, %v2880_v12  ;;  %v2883_v8 = vpop.f32.mrb[10].mxu1 }
 0x35a   :  { %v2884_v15 = vpop.f32.mrb[11].mxu1 }
 0x35b   :  { %v2454_v18 = vadd.f32 %v2882_v14, %v2815_v1 }
 0x377   :  { %v2902_v16 = vpop.f32.mrb[12].mxu1 }
 0x378   :  { %v2903_v17 = vpop.f32.mrb[13].mxu1 }
 0x379   :  { %v2904_v9 = vadd.f32 %v2903_v17, %v2902_v16  ;;  %v2905_v19 = vpop.f32.mrb[14].mxu1 }
 0x37a   :  { %v2906_v20 = vpop.f32.mrb[15].mxu1 }
 0x37b   :  { %v2494_v23 = vadd.f32 %v2904_v9, %v2454_v18 }
 0x3d7   :  { %v2924_v11 = vpop.f32.mrb[16].mxu1 }
 0x3d8   :  { %v2925_v24 = vpop.f32.mrb[17].mxu1 }
 0x3d9   :  { %v2926_v26 = vadd.f32 %v2925_v24, %v2924_v11  ;;  %v2927_v27 = vpop.f32.mrb[18].mxu1 }
 0x3da   :  { %v2928_v36 = vpop.f32.mrb[19].mxu1 }
 0x3db   :  { %v2534_v28 = vadd.f32 %v2926_v26, %v2494_v23 }
 0x3dd   :  { %2539 = vst [vmem:[#allocation10] sm:$0xff] %v2534_v28 }
 0x3de   :  { %3491 = shalt.err (!%p3488_p8)
}
 0x3df   :  { %s3492_s12 = scalar_lea.hbm %s3705_s7, 128 }
 0x3e0   :  { %p3493_p9 = scmp.ne.s32.totalorder %s3705_s7, %s3492_s12  ;;  %p3496_p10 = scmp.lt.u32.totalorder %s3492_s12, %s3705_s7 }
 0x3e2   :  { %p3498_p11 = pnand %p3496_p10, %p3493_p9 }
 0x3e4   :  { %3501 = shalt.err (!%p3498_p11)
}
 0x3e5   :  { %2549 = dma.vmem_to_hbm [thread:$0]  %s2547_s9, 128, %s3705_s7, [#allocation4]  }
 0x3e6   :  { %3508 = dma.done.wait [#allocation4], 128  }
 0x3e7   :  { %3509 = vsyncadd [#allocation4], 4294967168 }
 0x3e8   :  { %2553 = vsyncpa [#allocation3], 1 }
 0x3e9   :  { %2554 = vsyncpa [#allocation6], 1 }
 0x3ea   :  { %2555 = vsyncpa [#allocation9], 1 }
 0x3eb   :  { %2556 = vsyncpa [#allocation4], 1 }

</bundles_post_ra>
